<compile_context>
chip_gen: v5e
topology: v5e:2x2
jax: 0.10.0
libtpu: 0.0.40
codegen_flags: <defaults>
</compile_context>

<pallas_src>
import jax
import jax.numpy as jnp
from jax.experimental import pallas as pl
from jax.experimental.pallas import tpu as pltpu


def _round_up(x, m):
    return ((x + m - 1) // m) * m


# ---------------- Fused kernel: out = (A_hat @ H + H) @ W2 + b2 ------------- #
#   with H recomputed per k-tile as ReLU(X_k @ W1 + b1)                        #
def _fused_gnn_kernel(adj_ref, x_ref, w1_ref, b1_ref, w2_ref, b2_ref,
                      out_ref, acc_ref):
    i = pl.program_id(0)            # row tile of A_hat / output (parallel)
    k = pl.program_id(1)            # contraction tile (arbitrary, last)

    @pl.when(k == 0)
    def _zero():
        acc_ref[...] = jnp.zeros_like(acc_ref)

    # Fused encoder: recompute H for the k-tile of X (bf16 MXU, f32 epilogue,
    # round to bf16 exactly like a stored-H path would).
    hk_f32 = jnp.maximum(
        jnp.dot(x_ref[...], w1_ref[...], preferred_element_type=jnp.float32)
        + b1_ref[...], 0.0)
    hk = hk_f32.astype(jnp.bfloat16)

    # Weighted neighbor aggregation on the MXU: bf16 inputs, f32 accumulation.
    acc_ref[...] += jnp.dot(adj_ref[...], hk,
                            preferred_element_type=jnp.float32)

    # Self loop folded into the kernel: tiles are square (blk x blk), so the
    # diagonal block of A_hat lives in the k == i step, where hk holds exactly
    # rows i*blk:(i+1)*blk of H.
    @pl.when(k == i)
    def _self_loop():
        acc_ref[...] += hk.astype(jnp.float32)

    @pl.when(k == pl.num_programs(1) - 1)
    def _finalize():
        m = acc_ref[...].astype(jnp.bfloat16)            # bf16 for the MXU
        logits = jnp.dot(m, w2_ref[...], preferred_element_type=jnp.float32)
        out_ref[...] = logits + b2_ref[...]              # f32, lane-dense store


def fused_gnn_pallas(adj_p, x_p, w1_p, b1_p, w2_p, b2_p, *, blk):
    n_pad = adj_p.shape[0]
    f = x_p.shape[1]
    h_pad = w1_p.shape[1]
    c_pad = w2_p.shape[1]
    grid = (n_pad // blk, n_pad // blk)
    return pl.pallas_call(
        _fused_gnn_kernel,
        out_shape=jax.ShapeDtypeStruct((n_pad, c_pad), jnp.float32),
        grid=grid,
        in_specs=[
            pl.BlockSpec((blk, blk), lambda i, k: (i, k)),      # A_hat tile
            pl.BlockSpec((blk, f), lambda i, k: (k, 0)),        # X k-tile
            pl.BlockSpec((f, h_pad), lambda i, k: (0, 0)),      # W1 (resident)
            pl.BlockSpec((1, h_pad), lambda i, k: (0, 0)),      # b1
            pl.BlockSpec((h_pad, c_pad), lambda i, k: (0, 0)),  # W2 (resident)
            pl.BlockSpec((1, c_pad), lambda i, k: (0, 0)),      # b2
        ],
        out_specs=pl.BlockSpec((blk, c_pad), lambda i, k: (i, 0)),
        scratch_shapes=[pltpu.VMEM((blk, h_pad), jnp.float32)],
        compiler_params=pltpu.CompilerParams(
            dimension_semantics=("parallel", "arbitrary"),
            vmem_limit_bytes=64 * 1024 * 1024),
    )(adj_p, x_p, w1_p, b1_p, w2_p, b2_p)


# ------------------------------- Glue (JAX) -------------------------------- #
def build_adjacency(edge_index, edge_features, xbatch, w_edge, num_nodes):
    """Dense weighted adjacency (no self loops - those are added in-kernel);
    cross-batch edges masked via xbatch.  Returned in bf16 to halve the HBM /
    VMEM traffic of the adjacency tiles (the dominant stream)."""
    src = edge_index[0]
    dst = edge_index[1]
    e_w = jax.nn.sigmoid(edge_features @ w_edge)                 # [E]
    same_graph = (xbatch[src] == xbatch[dst]).astype(jnp.float32)
    e_w = e_w * same_graph
    adj = jnp.zeros((num_nodes, num_nodes), dtype=jnp.float32)
    adj = adj.at[dst, src].add(e_w)                              # src -> dst
    return adj.astype(jnp.bfloat16)


class GNNExplainerWrapperPallas:
    """JAX/Pallas equivalent of GNNExplainerWrapper(model).forward(...)."""

    def __init__(self, params, max_blk=512):
        assert max_blk % 128 == 0, "max_blk must be a multiple of 128"
        self.max_blk = max_blk
        f, h = params["w1"].shape
        _, c = params["w2"].shape
        hp = _round_up(h, 128)
        cp = _round_up(c, 128)
        self.num_classes = c
        # Zero-pad weight lane dims once (keeps math identical), cast matmul
        # operands to bf16; biases stay f32 (epilogue runs in f32).
        self.w1 = jnp.pad(params["w1"], ((0, 0), (0, hp - h))).astype(jnp.bfloat16)
        self.b1 = jnp.pad(params["b1"], ((0, 0), (0, hp - h))).astype(jnp.float32)
        self.w2 = jnp.pad(params["w2"], ((0, hp - h), (0, cp - c))).astype(jnp.bfloat16)
        self.b2 = jnp.pad(params["b2"], ((0, 0), (0, cp - c))).astype(jnp.float32)
        self.w_edge = params["w_edge"].astype(jnp.float32)

    def _pick_tiling(self, n):
        n_pad = max(128, _round_up(n, 128))
        if n_pad <= self.max_blk:
            return n_pad, n_pad          # single fused grid step, all in VMEM
        blk = self.max_blk
        return _round_up(n, blk), blk    # square blk x blk adjacency tiles

    def __call__(self, x, edge_index, edge_features=None, xbatch=None):
        n = x.shape[0]
        n_pad, blk = self._pick_tiling(n)
        if edge_features is None:
            edge_features = jnp.zeros(
                (edge_index.shape[1], self.w_edge.shape[0]), jnp.float32)
        if xbatch is None:
            xbatch = jnp.zeros((n,), jnp.int32)

        # Padded node rows stay zero in X and in the adjacency, so they never
        # pollute valid rows (the self-loop on padded rows only touches padded
        # output rows, which are sliced away below).
        x_p = jnp.pad(x, ((0, n_pad - n), (0, 0))).astype(jnp.bfloat16)
        adj_p = build_adjacency(edge_index, edge_features, xbatch,
                                self.w_edge, n_pad)

        out_p = fused_gnn_pallas(adj_p, x_p, self.w1, self.b1,
                                 self.w2, self.b2, blk=blk)
        node_pred = out_p[:n, :self.num_classes]

        # The wrapped model returns {'node_pred': [tensor]}; wrapper takes [0].
        res = {"node_pred": [node_pred]}
        return res["node_pred"][0]


# --------------------------------- Main ------------------------------------ #
if __name__ == "__main__":
    key = jax.random.PRNGKey(0)
    kx, ke, kef, kw1, kw2, kwe = jax.random.split(key, 6)

    N, F, H, C = 300, 32, 64, 4    # nodes, in-features, hidden, classes
    E, Fe = 600, 8                 # edges, edge-feature dim

    # deterministic synthetic inputs
    x = jax.random.normal(kx, (N, F), dtype=jnp.float32)
    edge_index = jax.random.randint(ke, (2, E), 0, N, dtype=jnp.int32)
    edge_features = jax.random.normal(kef, (E, Fe), dtype=jnp.float32)
    xbatch = jnp.concatenate(
        [jnp.zeros((N // 2,), jnp.int32), jnp.ones((N - N // 2,), jnp.int32)])

    # deterministic synthetic parameters (the "model" weights)
    params = {
        "w1": jax.random.normal(kw1, (F, H), dtype=jnp.float32) * (1.0 / F ** 0.5),
        "b1": jnp.zeros((1, H), jnp.float32),
        "w2": jax.random.normal(kw2, (H, C), dtype=jnp.float32) * (1.0 / H ** 0.5),
        "b2": jnp.zeros((1, C), jnp.float32),
        "w_edge": jax.random.normal(kwe, (Fe,), dtype=jnp.float32) * (1.0 / Fe ** 0.5),
    }

    # Reference in plain JAX, replicating the bf16 rounding points of the
    # kernel path (bf16 matmul inputs, f32 accumulation, bf16 intermediates).
    f32 = jnp.float32
    x_b = x.astype(jnp.bfloat16).astype(f32)
    w1_b = params["w1"].astype(jnp.bfloat16).astype(f32)
    w2_b = params["w2"].astype(jnp.bfloat16).astype(f32)
    adj_b = build_adjacency(edge_index, edge_features, xbatch,
                            params["w_edge"], N).astype(f32)
    h_ref = jnp.maximum(x_b @ w1_b + params["b1"], 0.0)
    h_ref = h_ref.astype(jnp.bfloat16).astype(f32)
    m_ref = adj_b @ h_ref + h_ref                       # self loop
    m_ref = m_ref.astype(jnp.bfloat16).astype(f32)
    ref = m_ref @ w2_b + params["b2"]

    # Path 1: default tiling -> N_pad = 384 <= 512 -> single fused grid step
    # (everything resident in VMEM for the whole call).
    model = GNNExplainerWrapperPallas(params)               # max_blk = 512
    out = jax.block_until_ready(model(x, edge_index, edge_features, xbatch))
    assert out.shape == (N, C)
    assert jnp.allclose(out, ref, atol=1e-1, rtol=2e-2), (
        float(jnp.max(jnp.abs(out - ref))))

    # Path 2: force blk=128 -> (3, 3) grid, exercises the tiled/accumulator
    # path used for large graphs.
    model_tiled = GNNExplainerWrapperPallas(params, max_blk=128)
    out_t = jax.block_until_ready(
        model_tiled(x, edge_index, edge_features, xbatch))
    assert out_t.shape == (N, C)
    assert jnp.allclose(out_t, ref, atol=1e-1, rtol=2e-2), (
        float(jnp.max(jnp.abs(out_t - ref))))

    print("KERNEL_OK")
</pallas_src>

<mosaic_0001>
module attributes {stable_mosaic.version = 11 : i64} {
  func.func @_fused_gnn_kernel(%arg0: i32, %arg1: i32, %arg2: memref<384x384xbf16, #tpu.memory_space<vmem>>, %arg3: memref<384x32xbf16, #tpu.memory_space<vmem>>, %arg4: memref<32x128xbf16, #tpu.memory_space<vmem>>, %arg5: memref<1x128xf32, #tpu.memory_space<vmem>>, %arg6: memref<128x128xbf16, #tpu.memory_space<vmem>>, %arg7: memref<1x128xf32, #tpu.memory_space<vmem>>, %arg8: memref<384x128xf32, #tpu.memory_space<vmem>>, %arg9: memref<384x128xf32, #tpu.memory_space<vmem>>) attributes {dimension_semantics = [#tpu.dimension_semantics<parallel>, #tpu.dimension_semantics<arbitrary>], iteration_bounds = array<i64: 1, 1>, scalar_prefetch = 0 : i64, scratch_operands = 1 : i64, tpu.core_type = #tpu.core_type<tc>, window_params = [{transform_indices = @transform_0, window_bounds = array<i64: 384, 384>}, {transform_indices = @transform_1, window_bounds = array<i64: 384, 32>}, {pipeline_mode = #tpu.pipeline_mode<synchronous>, transform_indices = @transform_2, window_bounds = array<i64: 32, 128>}, {pipeline_mode = #tpu.pipeline_mode<synchronous>, transform_indices = @transform_3, window_bounds = array<i64: 1, 128>}, {pipeline_mode = #tpu.pipeline_mode<synchronous>, transform_indices = @transform_4, window_bounds = array<i64: 128, 128>}, {pipeline_mode = #tpu.pipeline_mode<synchronous>, transform_indices = @transform_5, window_bounds = array<i64: 1, 128>}, {transform_indices = @transform_6, window_bounds = array<i64: 384, 128>}]} {
    %c0_i32 = arith.constant 0 : i32
    %0 = arith.cmpi eq, %arg1, %c0_i32 : i32
    %1 = arith.extui %0 : i1 to i32
    %c0_i32_0 = arith.constant 0 : i32
    %2 = arith.cmpi ne, %1, %c0_i32_0 : i32
    scf.if %2 {
      %cst_17 = arith.constant 0.000000e+00 : f32
      %23 = vector.broadcast %cst_17 : f32 to vector<384x128xf32>
      %c0_18 = arith.constant 0 : index
      %c0_19 = arith.constant 0 : index
      %24 = vector.load %arg9[%c0_18, %c0_19] : memref<384x128xf32, #tpu.memory_space<vmem>>, vector<384x128xf32>
      tpu.vector_store %arg9[%c0_18, %c0_19], %23 {strides = array<i32>} : memref<384x128xf32, #tpu.memory_space<vmem>>, vector<384x128xf32>,
    } else {
    }
    %c0 = arith.constant 0 : index
    %c0_1 = arith.constant 0 : index
    %3 = vector.load %arg3[%c0, %c0_1] : memref<384x32xbf16, #tpu.memory_space<vmem>>, vector<384x32xbf16>
    %c0_2 = arith.constant 0 : index
    %c0_3 = arith.constant 0 : index
    %4 = vector.load %arg4[%c0_2, %c0_3] : memref<32x128xbf16, #tpu.memory_space<vmem>>, vector<32x128xbf16>
    %cst = arith.constant dense<0.000000e+00> : vector<384x128xf32>
    %5 = tpu.matmul %3, %4, %cst {dimension_numbers = #tpu.dot_dimension_numbers<[1], [0], [0], [1], [0, 0, 1, 1], [], []>} : vector<384x32xbf16>, vector<32x128xbf16>, vector<384x128xf32> -> vector<384x128xf32>
    %c0_4 = arith.constant 0 : index
    %c0_5 = arith.constant 0 : index
    %6 = vector.load %arg5[%c0_4, %c0_5] : memref<1x128xf32, #tpu.memory_space<vmem>>, vector<1x128xf32>
    %7 = vector.broadcast %6 : vector<1x128xf32> to vector<384x128xf32>
    %8 = arith.addf %5, %7 : vector<384x128xf32>
    %cst_6 = arith.constant 0.000000e+00 : f32
    %9 = vector.broadcast %cst_6 : f32 to vector<384x128xf32>
    %10 = arith.maximumf %8, %9 : vector<384x128xf32>
    %11 = arith.truncf %10 : vector<384x128xf32> to vector<384x128xbf16>
    %c0_7 = arith.constant 0 : index
    %c0_8 = arith.constant 0 : index
    %12 = vector.load %arg9[%c0_7, %c0_8] : memref<384x128xf32, #tpu.memory_space<vmem>>, vector<384x128xf32>
    %c0_9 = arith.constant 0 : index
    %c0_10 = arith.constant 0 : index
    %13 = vector.load %arg2[%c0_9, %c0_10] : memref<384x384xbf16, #tpu.memory_space<vmem>>, vector<384x384xbf16>
    %cst_11 = arith.constant dense<0.000000e+00> : vector<384x128xf32>
    %14 = tpu.matmul %13, %11, %cst_11 {dimension_numbers = #tpu.dot_dimension_numbers<[1], [0], [0], [1], [0, 0, 1, 1], [], []>} : vector<384x384xbf16>, vector<384x128xbf16>, vector<384x128xf32> -> vector<384x128xf32>
    %15 = arith.addf %12, %14 : vector<384x128xf32>
    %c0_12 = arith.constant 0 : index
    %c0_13 = arith.constant 0 : index
    %16 = vector.load %arg9[%c0_12, %c0_13] : memref<384x128xf32, #tpu.memory_space<vmem>>, vector<384x128xf32>
    tpu.vector_store %arg9[%c0_12, %c0_13], %15 {strides = array<i32>} : memref<384x128xf32, #tpu.memory_space<vmem>>, vector<384x128xf32>,
    %17 = arith.cmpi eq, %arg1, %arg0 : i32
    %18 = arith.extui %17 : i1 to i32
    %c0_i32_14 = arith.constant 0 : i32
    %19 = arith.cmpi ne, %18, %c0_i32_14 : i32
    scf.if %19 {
      %c0_17 = arith.constant 0 : index
      %c0_18 = arith.constant 0 : index
      %23 = vector.load %arg9[%c0_17, %c0_18] : memref<384x128xf32, #tpu.memory_space<vmem>>, vector<384x128xf32>
      %24 = arith.extf %11 : vector<384x128xbf16> to vector<384x128xf32>
      %25 = arith.addf %23, %24 : vector<384x128xf32>
      %c0_19 = arith.constant 0 : index
      %c0_20 = arith.constant 0 : index
      %26 = vector.load %arg9[%c0_19, %c0_20] : memref<384x128xf32, #tpu.memory_space<vmem>>, vector<384x128xf32>
      tpu.vector_store %arg9[%c0_19, %c0_20], %25 {strides = array<i32>} : memref<384x128xf32, #tpu.memory_space<vmem>>, vector<384x128xf32>,
    } else {
    }
    %c0_i32_15 = arith.constant 0 : i32
    %20 = arith.cmpi eq, %arg1, %c0_i32_15 : i32
    %21 = arith.extui %20 : i1 to i32
    %c0_i32_16 = arith.constant 0 : i32
    %22 = arith.cmpi ne, %21, %c0_i32_16 : i32
    scf.if %22 {
      %c0_17 = arith.constant 0 : index
      %c0_18 = arith.constant 0 : index
      %23 = vector.load %arg9[%c0_17, %c0_18] : memref<384x128xf32, #tpu.memory_space<vmem>>, vector<384x128xf32>
      %24 = arith.truncf %23 : vector<384x128xf32> to vector<384x128xbf16>
      %c0_19 = arith.constant 0 : index
      %c0_20 = arith.constant 0 : index
      %25 = vector.load %arg6[%c0_19, %c0_20] : memref<128x128xbf16, #tpu.memory_space<vmem>>, vector<128x128xbf16>
      %cst_21 = arith.constant dense<0.000000e+00> : vector<384x128xf32>
      %26 = tpu.matmul %24, %25, %cst_21 {dimension_numbers = #tpu.dot_dimension_numbers<[1], [0], [0], [1], [0, 0, 1, 1], [], []>} : vector<384x128xbf16>, vector<128x128xbf16>, vector<384x128xf32> -> vector<384x128xf32>
      %c0_22 = arith.constant 0 : index
      %c0_23 = arith.constant 0 : index
      %27 = vector.load %arg7[%c0_22, %c0_23] : memref<1x128xf32, #tpu.memory_space<vmem>>, vector<1x128xf32>
      %28 = vector.broadcast %27 : vector<1x128xf32> to vector<384x128xf32>
      %29 = arith.addf %26, %28 : vector<384x128xf32>
      %c0_24 = arith.constant 0 : index
      %c0_25 = arith.constant 0 : index
      %30 = vector.load %arg8[%c0_24, %c0_25] : memref<384x128xf32, #tpu.memory_space<vmem>>, vector<384x128xf32>
      tpu.vector_store %arg8[%c0_24, %c0_25], %29 {strides = array<i32>} : memref<384x128xf32, #tpu.memory_space<vmem>>, vector<384x128xf32>,
    } else {
    }
    return
  }
  func.func @transform_0(%arg0: i32, %arg1: i32) -> (i32, i32) {
    %c0_i32 = arith.constant 0 : i32
    return %arg0, %arg1 : i32, i32
  }
  func.func @transform_1(%arg0: i32, %arg1: i32) -> (i32, i32) {
    %c0_i32 = arith.constant 0 : i32
    %c0_i32_0 = arith.constant 0 : i32
    return %arg1, %c0_i32 : i32, i32
  }
  func.func @transform_2(%arg0: i32, %arg1: i32) -> (i32, i32) {
    %c0_i32 = arith.constant 0 : i32
    %c0_i32_0 = arith.constant 0 : i32
    %c0_i32_1 = arith.constant 0 : i32
    return %c0_i32, %c0_i32_0 : i32, i32
  }
  func.func @transform_3(%arg0: i32, %arg1: i32) -> (i32, i32) {
    %c0_i32 = arith.constant 0 : i32
    %c0_i32_0 = arith.constant 0 : i32
    %c0_i32_1 = arith.constant 0 : i32
    return %c0_i32, %c0_i32_0 : i32, i32
  }
  func.func @transform_4(%arg0: i32, %arg1: i32) -> (i32, i32) {
    %c0_i32 = arith.constant 0 : i32
    %c0_i32_0 = arith.constant 0 : i32
    %c0_i32_1 = arith.constant 0 : i32
    return %c0_i32, %c0_i32_0 : i32, i32
  }
  func.func @transform_5(%arg0: i32, %arg1: i32) -> (i32, i32) {
    %c0_i32 = arith.constant 0 : i32
    %c0_i32_0 = arith.constant 0 : i32
    %c0_i32_1 = arith.constant 0 : i32
    return %c0_i32, %c0_i32_0 : i32, i32
  }
  func.func @transform_6(%arg0: i32, %arg1: i32) -> (i32, i32) {
    %c0_i32 = arith.constant 0 : i32
    %c0_i32_0 = arith.constant 0 : i32
    return %arg0, %c0_i32 : i32, i32
  }
}

</mosaic_0001>

<bundles_post_ra>
// kernel: tpu_custom_call.1
= control target key start
LH: loop header
LB: loop body
LE: loop exit
PB: predicated region body
PF: predicated region fallthrough
CT: control target
= control target key end

     0   :  { %11 = vsyncpa [#allocation4], 0  ;;  %s3474_s0 = inlined_call_operand.hbm [shape: bf16[384,384], index: 0, kind: input, shape index: {}]   ;;  %s3475_s1 = inlined_call_operand.vmem [shape: bf16[384,32], index: 1, kind: input, shape index: {}]   ;;  %s3476_s2 = inlined_call_operand.vmem [shape: bf16[32,128], index: 2, kind: input, shape index: {}]   ;;  %s3477_s3 = inlined_call_operand.vmem [shape: f32[1,128], index: 3, kind: input, shape index: {}]   ;;  %s3478_s4 = inlined_call_operand.vmem [shape: bf16[128,128], index: 4, kind: input, shape index: {}]   ;;  %s3479_s5 = inlined_call_operand.vmem [shape: f32[1,128], index: 5, kind: input, shape index: {}]   ;;  %s3480_s6 = inlined_call_operand.hbm [shape: f32[384,128], index: 6, kind: output, shape index: {}]  }
   0x1   :  { %12 = vsyncpa [#allocation5], 0  ;;  %s17_s23 = sshll.u32 %s3474_s0, 4  ;;  %s2897_s24 = smov [#allocation3]   ;;  %s18_s23 = int_to_ptr.hbm [resolvable:$true] %s17_s23 }
   0x2   :  { %s19_s25 = sshll.u32 %s2897_s24, 4  ;;  %s2898_s26 = smov 192   ;;  %s20_s25 = int_to_ptr.vmem [resolvable:$true] %s19_s25 }
   0x3   :  { %s2899_s27 = smov 12  }
   0x4   :  { %25 = dma.hbm_to_vmem [thread:$0]  %s18_s23, 9216, %s20_s25, [#allocation4], %s2898_s26, %s2898_s26, %s2899_s27  }
   0x5   :  { %2893 = dma.done.wait [#allocation4], 9216  }
   0x6   :  { %2894 = vsyncadd [#allocation4], 4294958080  ;;  %v2742_v0 = vld [vmem:[%s3476_s2 + $0x8] sm:$0xff]  ;;  %v2741_v1 = vld [vmem:[%s3476_s2] sm:$0xff]  ;;  %vm281_vm0 = vcmask 261120   ;;  %s2256_s22 = sshll.u32 %s3480_s6, 4  ;;  %s2257_s22 = int_to_ptr.hbm [resolvable:$true] %s2256_s22 }
   0x7   :  { %360 = vmatpush.bf16.msra.mxu0 %v2742_v0  ;;  %2823 = vmatpush.bf16.msra.mxu1 %v2742_v0  ;;  %v2717_v2 = vld [vmem:[%s3475_s1] sm:$0xff]  ;;  %v2724_v3 = vld [vmem:[%s3475_s1 + $0x38] sm:$0xff]  ;;  %v2731_v4 = vld [vmem:[%s3475_s1 + $0x70] sm:$0xff]  ;;  %s2901_s23 = smov 128   ;;  %s2902_s24 = smov 8  }
   0x8   :  { %2824 = vmatpush.bf16.msra.mxu2 %v2742_v0  ;;  %2825 = vmatpush.bf16.msra.mxu3 %v2742_v0  ;;  %v2737_v5 = vld [vmem:[%s3475_s1 + $0xa0] sm:$0xff]  ;;  %v2718_v6 = vld [vmem:[%s3475_s1 + $0x8] sm:$0xff]  ;;  %v2732_v8 = vld [vmem:[%s3475_s1 + $0x78] sm:$0xff] }
   0x9   :  { %v2725_v7 = vld [vmem:[%s3475_s1 + $0x40] sm:$0xff]  ;;  %v2738_v9 = vld [vmem:[%s3475_s1 + $0xa8] sm:$0xff]  ;;  %v2719_v10 = vld [vmem:[%s3475_s1 + $0x10] sm:$0xff] }
   0xa   :  { %v2726_v11 = vld [vmem:[%s3475_s1 + $0x48] sm:$0xff]  ;;  %v2733_v12 = vld [vmem:[%s3475_s1 + $0x80] sm:$0xff]  ;;  %v2739_v13 = vld [vmem:[%s3475_s1 + $0xb0] sm:$0xff] }
   0xb   :  { %361 = vmatpush.bf16.msra.mxu0 %v2741_v1  ;;  %2826 = vmatpush.bf16.msra.mxu1 %v2741_v1  ;;  %v2720_v14 = vld [vmem:[%s3475_s1 + $0x18] sm:$0xff]  ;;  %v2727_v15 = vld [vmem:[%s3475_s1 + $0x50] sm:$0xff]  ;;  %v2734_v16 = vld [vmem:[%s3475_s1 + $0x88] sm:$0xff] }
   0xc   :  { %2827 = vmatpush.bf16.msra.mxu2 %v2741_v1  ;;  %2828 = vmatpush.bf16.msra.mxu3 %v2741_v1  ;;  %v2740_v17 = vld [vmem:[%s3475_s1 + $0xb8] sm:$0xff]  ;;  %v2721_v18 = vld [vmem:[%s3475_s1 + $0x20] sm:$0xff]  ;;  %v2735_v20 = vld [vmem:[%s3475_s1 + $0x90] sm:$0xff] }
   0xd   :  { %v2728_v19 = vld [vmem:[%s3475_s1 + $0x58] sm:$0xff]  ;;  %v2722_v21 = vld [vmem:[%s3475_s1 + $0x28] sm:$0xff]  ;;  %v2729_v22 = vld [vmem:[%s3475_s1 + $0x60] sm:$0xff] }
   0xe   :  { %2373 = vmatmul.msk.bf16.vlgmr.msra.gmra.mxu0 %vm281_vm0, %v2717_v2  ;;  %2380 = vmatmul.msk.bf16.vlgmr.msra.gmra.mxu1 %vm281_vm0, %v2724_v3  ;;  %v2736_v23 = vld [vmem:[%s3475_s1 + $0x98] sm:$0xff]  ;;  %v2723_v24 = vld [vmem:[%s3475_s1 + $0x30] sm:$0xff]  ;;  %v2730_v25 = vld [vmem:[%s3475_s1 + $0x68] sm:$0xff] }
   0xf   :  { %2387 = vmatmul.msk.bf16.vlgmr.msra.gmra.mxu2 %vm281_vm0, %v2731_v4  ;;  %2393 = vmatmul.msk.bf16.vlgmr.msra.gmra.mxu3 %vm281_vm0, %v2737_v5  ;;  %v3046_v26 = vld [vmem:[%s3477_s3] ss:$0 sm:$0xff] }
  0x1e   :  { %2374 = vmatmul.msk.bf16.gmra.mxu0 %vm281_vm0, %v2718_v6  ;;  %2381 = vmatmul.msk.bf16.gmra.mxu1 %vm281_vm0, %v2725_v7 }
  0x1f   :  { %2388 = vmatmul.msk.bf16.gmra.mxu2 %vm281_vm0, %v2732_v8  ;;  %2394 = vmatmul.msk.bf16.gmra.mxu3 %vm281_vm0, %v2738_v9 }
  0x2e   :  { %2375 = vmatmul.msk.bf16.gmra.mxu0 %vm281_vm0, %v2719_v10  ;;  %2382 = vmatmul.msk.bf16.gmra.mxu1 %vm281_vm0, %v2726_v11 }
  0x2f   :  { %2389 = vmatmul.msk.bf16.gmra.mxu2 %vm281_vm0, %v2733_v12  ;;  %2395 = vmatmul.msk.bf16.gmra.mxu3 %vm281_vm0, %v2739_v13 }
  0x3e   :  { %2376 = vmatmul.msk.bf16.gmra.mxu0 %vm281_vm0, %v2720_v14  ;;  %2383 = vmatmul.msk.bf16.gmra.mxu1 %vm281_vm0, %v2727_v15 }
  0x3f   :  { %2390 = vmatmul.msk.bf16.gmra.mxu2 %vm281_vm0, %v2734_v16  ;;  %2396 = vmatmul.msk.bf16.gmra.mxu3 %vm281_vm0, %v2740_v17 }
  0x4e   :  { %2377 = vmatmul.msk.bf16.gmra.mxu0 %vm281_vm0, %v2721_v18  ;;  %2384 = vmatmul.msk.bf16.gmra.mxu1 %vm281_vm0, %v2728_v19 }
  0x4f   :  { %2391 = vmatmul.msk.bf16.gmra.mxu2 %vm281_vm0, %v2735_v20 }
  0x5e   :  { %2378 = vmatmul.msk.bf16.gmra.mxu0 %vm281_vm0, %v2722_v21  ;;  %2385 = vmatmul.msk.bf16.gmra.mxu1 %vm281_vm0, %v2729_v22 }
  0x5f   :  { %2392 = vmatmul.msk.bf16.gmra.mxu2 %vm281_vm0, %v2736_v23 }
  0x6e   :  { %2379 = vmatmul.msk.bf16.gmra.mxu0 %vm281_vm0, %v2723_v24  ;;  %2386 = vmatmul.msk.bf16.gmra.mxu1 %vm281_vm0, %v2730_v25 }
  0x8b   :  { %v3048_v27 = vpop.f32.mrf.mxu0  ;;  %v398_v28 = vpop.f32.mrf.mxu1 }
  0x8c   :  { %v399_v29 = vadd.f32 %v3046_v26, %v398_v28 }
  0x8e   :  { %v497_v30 = vmax.f32 %v399_v29, 0.0 }
  0x90   :  { %v3056_v36 = vpack.c.bf16 %v497_v30, %v497_v30 }
  0x92   :  { %v433_v31 = vpop.f32.mrf.mxu2  ;;  %v3051_v32 = vpop.f32.mrf.mxu3  ;;  %v1169_v41 = vunpack.c.l.b16 %v3056_v36 }
  0x93   :  { %v3053_v33 = vpop.f32.mrf.mxu0  ;;  %v400_v34 = vpop.f32.mrf.mxu1  ;;  %v434_v51 = vadd.f32 %v3046_v26, %v433_v31 }
  0x94   :  { %v401_v35 = vadd.f32 %v3046_v26, %v400_v34 }
  0x95   :  { %v511_v56 = vmax.f32 %v434_v51, 0.0 }
  0x96   :  { %v498_v37 = vmax.f32 %v401_v35, 0.0 }
  0x97   :  { %v3082_v63 = vpack.c.bf16 %v511_v56, %v511_v56 }
  0x98   :  { %v3058_v38 = vpack.c.bf16 %v498_v37, %v498_v37 }
  0x99   :  { %v1183_v9 = vunpack.c.l.b16 %v3082_v63 }
  0x9a   :  { %v435_v39 = vpop.f32.mrf.mxu2  ;;  %v3060_v40 = vpop.f32.mrf.mxu3  ;;  %v1170_v42 = vunpack.c.l.b16 %v3058_v38 }
  0x9b   :  { %v3064_v43 = vpop.f32.mrf.mxu0  ;;  %v3066_v44 = vpop.f32.mrf.mxu1  ;;  %v436_v52 = vadd.f32 %v3046_v26, %v435_v39 }
  0x9c   :  { %v1210_v45 = vpack.c.b16 %v1170_v42, %v1169_v41 }
  0x9d   :  { %v512_v57 = vmax.f32 %v436_v52, 0.0 }
  0x9e   :  { %1251 = vmatpush.bf16.msrb.mxu1 %v1210_v45 }
  0x9f   :  { %v3084_v0 = vpack.c.bf16 %v512_v57, %v512_v57 }
  0xa1   :  { %v1184_v10 = vunpack.c.l.b16 %v3084_v0 }
  0xa2   :  { %v438_v46 = vpop.f32.mrf.mxu2  ;;  %v468_v47 = vpop.f32.mrf.mxu3 }
  0xa3   :  { %v3068_v48 = vpop.f32.mrf.mxu0  ;;  %v3070_v49 = vpop.f32.mrf.mxu1  ;;  %v439_v50 = vadd.f32 %v3046_v26, %v438_v46  ;;  %v1217_v11 = vpack.c.b16 %v1184_v10, %v1183_v9  ;;  %v469_v30 = vadd.f32 %v3046_v26, %v468_v47  ;;  %v464_v46 = vadd.f32 %v3046_v26, %v3051_v32 }
  0xa4   :  { %v466_v47 = vadd.f32 %v3046_v26, %v3060_v40 }
  0xa5   :  { %v513_v53 = vmax.f32 %v439_v50, 0.0  ;;  %v525_v50 = vmax.f32 %v469_v30, 0.0  ;;  %v523_v57 = vmax.f32 %v464_v46, 0.0 }
  0xa7   :  { %v3075_v58 = vpack.c.bf16 %v513_v53, %v513_v53  ;;  %v3142_v9 = vpack.c.bf16 %v523_v57, %v523_v57  ;;  %v3169_v57 = vadd.f32 %v3046_v26, %v3053_v33 }
  0xa9   :  { %v1185_v2 = vunpack.c.l.b16 %v3075_v58  ;;  %3498 = vst [vmem:[#allocation15_spill] sm:$0xff] %v3142_v9 }
  0xaa   :  { %v440_v54 = vpop.f32.mrf.mxu2  ;;  %v470_v55 = vpop.f32.mrf.mxu3 }
  0xab   :  { %v3077_v59 = vpop.f32.mrf.mxu0  ;;  %v3079_v60 = vpop.f32.mrf.mxu1  ;;  %v441_v61 = vadd.f32 %v3046_v26, %v440_v54  ;;  %v471_v31 = vadd.f32 %v3046_v26, %v470_v55 }
  0xad   :  { %v514_v62 = vmax.f32 %v441_v61, 0.0  ;;  %v526_v51 = vmax.f32 %v471_v31, 0.0 }
  0xaf   :  { %v3086_v1 = vpack.c.bf16 %v514_v62, %v514_v62  ;;  %v524_v62 = vmax.f32 %v466_v47, 0.0  ;;  %v3136_v32 = vpack.c.bf16 %v526_v51, %v526_v51 }
  0xb1   :  { %v1186_v3 = vunpack.c.l.b16 %v3086_v1  ;;  %3497 = vst [vmem:[#allocation14_spill] sm:$0xff] %v3136_v32  ;;  %v3144_v10 = vpack.c.bf16 %v524_v62, %v524_v62  ;;  %v3177_v62 = vadd.f32 %v3046_v26, %v3070_v49 }
  0xb2   :  { %v3090_v4 = vpop.f32.mrf.mxu2  ;;  %v473_v5 = vpop.f32.mrf.mxu3 }
  0xb3   :  { %v3092_v6 = vpop.f32.mrf.mxu0  ;;  %v3094_v7 = vpop.f32.mrf.mxu1  ;;  %v1218_v8 = vpack.c.b16 %v1186_v3, %v1185_v2  ;;  %v474_v21 = vadd.f32 %v3046_v26, %v473_v5  ;;  %v3134_v2 = vpack.c.bf16 %v525_v50, %v525_v50  ;;  %3499 = vst [vmem:[#allocation16_spill] sm:$0xff] %v3144_v10 }
  0xb5   :  { %1380 = vmatpush.bf16.msrb.mxu2 %v1218_v8  ;;  %v527_v24 = vmax.f32 %v474_v21, 0.0  ;;  %3496 = vst [vmem:[#allocation13_spill] sm:$0xff] %v3134_v2 }
  0xb7   :  { %v3120_v41 = vpack.c.bf16 %v527_v24, %v527_v24  ;;  %v1196_v24 = vunpack.c.l.b16 %v3144_v10 }
  0xb9   :  { %1381 = vmatpush.bf16.msrb.mxu2 %v1217_v11  ;;  %3493 = vst [vmem:[#allocation10_spill] sm:$0xff] %v3120_v41  ;;  %v1199_v55 = vunpack.c.l.b16 %v3120_v41  ;;  %v1197_v11 = vunpack.c.l.b16 %v3134_v2 }
  0xba   :  { %v445_v12 = vpop.f32.mrf.mxu2  ;;  %v475_v13 = vpop.f32.mrf.mxu3 }
  0xbb   :  { %v3098_v14 = vpop.f32.mrf.mxu0  ;;  %v3100_v15 = vpop.f32.mrf.mxu1  ;;  %v476_v22 = vadd.f32 %v3046_v26, %v475_v13  ;;  %v1198_v13 = vunpack.c.l.b16 %v3136_v32  ;;  %v446_v30 = vadd.f32 %v3046_v26, %v445_v12  ;;  %v3163_v12 = vadd.f32 %v3046_v26, %v3094_v7 }
  0xbd   :  { %v528_v25 = vmax.f32 %v476_v22, 0.0  ;;  %v1224_v22 = vpack.c.b16 %v1198_v13, %v1197_v11  ;;  %v516_v51 = vmax.f32 %v446_v30, 0.0 }
  0xbf   :  { %v3122_v42 = vpack.c.bf16 %v528_v25, %v528_v25 }
  0xc1   :  { %3494 = vst [vmem:[#allocation11_spill] sm:$0xff] %v3122_v42  ;;  %v1200_v56 = vunpack.c.l.b16 %v3122_v42 }
  0xc2   :  { %v448_v16 = vpop.f32.mrf.mxu2  ;;  %v478_v17 = vpop.f32.mrf.mxu3 }
  0xc3   :  { %v3102_v18 = vpop.f32.mrf.mxu0  ;;  %v3104_v19 = vpop.f32.mrf.mxu1  ;;  %v479_v20 = vadd.f32 %v3046_v26, %v478_v17  ;;  %v1225_v8 = vpack.c.b16 %v1200_v56, %v1199_v55  ;;  %v449_v50 = vadd.f32 %v3046_v26, %v448_v16 }
  0xc4   :  { %v3190_v49 = vadd.f32 %v3046_v26, %v3102_v18 }
  0xc5   :  { %v529_v23 = vmax.f32 %v479_v20, 0.0  ;;  %v517_v16 = vmax.f32 %v449_v50, 0.0 }
  0xc7   :  { %v3113_v34 = vpack.c.bf16 %v529_v23, %v529_v23  ;;  %v1195_v23 = vunpack.c.l.b16 %v3142_v9 }
  0xc9   :  { %3492 = vst [vmem:[#allocation9_spill] sm:$0xff] %v3113_v34  ;;  %v1201_v53 = vunpack.c.l.b16 %v3113_v34  ;;  %v1223_v25 = vpack.c.b16 %v1196_v24, %v1195_v23 }
  0xca   :  { %v3109_v28 = vpop.f32.mrf.mxu2  ;;  %v480_v29 = vpop.f32.mrf.mxu3 }
  0xcb   :  { %v3115_v35 = vpop.f32.mrf.mxu0  ;;  %v3117_v37 = vpop.f32.mrf.mxu1  ;;  %v481_v39 = vadd.f32 %v3046_v26, %v480_v29  ;;  %v444_v29 = vadd.f32 %v3046_v26, %v3090_v4  ;;  %v3159_v4 = vadd.f32 %v3046_v26, %v3092_v6  ;;  %v3179_v6 = vpack.c.bf16 %v516_v51, %v516_v51 }
  0xcc   :  { %v451_v7 = vadd.f32 %v3046_v26, %v3109_v28  ;;  %v3195_v28 = vadd.f32 %v3046_v26, %v3098_v14 }
  0xcd   :  { %v530_v45 = vmax.f32 %v481_v39, 0.0  ;;  %v515_v47 = vmax.f32 %v444_v29, 0.0  ;;  %v3201_v29 = vpack.c.bf16 %v517_v16, %v517_v16 }
  0xcf   :  { %v3128_v52 = vpack.c.bf16 %v530_v45, %v530_v45  ;;  %v3165_v56 = vpack.c.bf16 %v515_v47, %v515_v47 }
  0xd1   :  { %3495 = vst [vmem:[#allocation12_spill] sm:$0xff] %v3128_v52  ;;  %v1202_v54 = vunpack.c.l.b16 %v3128_v52 }
  0xd2   :  { %v453_v61 = vpop.f32.mrf.mxu2 }
  0xd3   :  { %v3138_v40 = vpop.f32.mrf.mxu0  ;;  %v3140_v3 = vpop.f32.mrf.mxu1  ;;  %v1226_v5 = vpack.c.b16 %v1202_v54, %v1201_v53  ;;  %v454_v53 = vadd.f32 %v3046_v26, %v453_v61  ;;  %v3173_v61 = vadd.f32 %v3046_v26, %v3068_v48 }
  0xd5   :  { %1509 = vmatpush.bf16.msrb.mxu3 %v1226_v5 }
  0xd9   :  { %1510 = vmatpush.bf16.msrb.mxu3 %v1225_v8  ;;  %v519_v8 = vmax.f32 %v454_v53, 0.0 }
  0xda   :  { %v455_v17 = vpop.f32.mrf.mxu2 }
  0xdb   :  { %v388_v20 = vpop.f32.mrf.mxu0  ;;  %v423_v21 = vpop.f32.mrf.mxu1  ;;  %v456_v54 = vadd.f32 %v3046_v26, %v455_v17  ;;  %v3206_v50 = vpack.c.bf16 %v519_v8, %v519_v8 }
  0xdd   :  { %1511 = vmatpush.bf16.msrb.mxu3 %v1224_v22  ;;  %v520_v11 = vmax.f32 %v456_v54, 0.0  ;;  %v3216_v54 = vadd.f32 %v3046_v26, %v3104_v19 }
  0xdf   :  { %v3208_v51 = vpack.c.bf16 %v520_v11, %v520_v11  ;;  %v1189_v11 = vunpack.c.l.b16 %v3201_v29 }
  0xe1   :  { %1512 = vmatpush.bf16.msrb.mxu3 %v1223_v25  ;;  %v3199_v25 = vadd.f32 %v3046_v26, %v3100_v15  ;;  %3501 = vst [vmem:[#allocation18_spill] sm:$0xff] %v3208_v51 }
  0xe2   :  { %v458_v31 = vpop.f32.mrf.mxu2 }
  0xe3   :  { %v390_v39 = vpop.f32.mrf.mxu0  ;;  %v425_v45 = vpop.f32.mrf.mxu1  ;;  %v459_v46 = vadd.f32 %v3046_v26, %v458_v31  ;;  %v518_v31 = vmax.f32 %v451_v7, 0.0  ;;  %v389_v7 = vadd.f32 %v3046_v26, %v388_v20  ;;  %v1191_v20 = vunpack.c.l.b16 %v3206_v50 }
  0xe4   :  { %v426_v16 = vadd.f32 %v3046_v26, %v425_v45 }
  0xe5   :  { %v521_v55 = vmax.f32 %v459_v46, 0.0 }
  0xe6   :  { %v508_v18 = vmax.f32 %v426_v16, 0.0 }
  0xe7   :  { %v3183_v13 = vpack.c.bf16 %v521_v55, %v521_v55  ;;  %v391_v55 = vadd.f32 %v3046_v26, %v390_v39  ;;  %v421_v39 = vadd.f32 %v3046_v26, %v3140_v3  ;;  %v493_v3 = vmax.f32 %v389_v7, 0.0 }
  0xe9   :  { %3500 = vst [vmem:[#allocation17_spill] sm:$0xff] %v3183_v13  ;;  %v1193_v53 = vunpack.c.l.b16 %v3183_v13  ;;  %v494_v48 = vmax.f32 %v391_v55, 0.0  ;;  %v506_v52 = vmax.f32 %v421_v39, 0.0 }
  0xea   :  { %v460_v5 = vpop.f32.mrf.mxu2 }
  0xeb   :  { %v393_v33 = vpop.f32.mrf.mxu0  ;;  %v428_v17 = vpop.f32.mrf.mxu1  ;;  %v461_v22 = vadd.f32 %v3046_v26, %v460_v5  ;;  %v424_v5 = vadd.f32 %v3046_v26, %v423_v21  ;;  %v1192_v21 = vunpack.c.l.b16 %v3208_v51  ;;  %v3243_v34 = vpack.c.bf16 %v494_v48, %v494_v48 }
  0xec   :  { %v394_v46 = vadd.f32 %v3046_v26, %v393_v33  ;;  %v429_v47 = vadd.f32 %v3046_v26, %v428_v17  ;;  %v3224_v33 = vpack.c.bf16 %v518_v31, %v518_v31  ;;  %v386_v17 = vadd.f32 %v3046_v26, %v3138_v40 }
  0xed   :  { %v522_v30 = vmax.f32 %v461_v22, 0.0  ;;  %v384_v40 = vadd.f32 %v3046_v26, %v3115_v35  ;;  %v3245_v35 = vpack.c.bf16 %v508_v18, %v508_v18  ;;  %v3262_v39 = vpack.c.bf16 %v506_v52, %v506_v52  ;;  %v2407_v52 = vld [vmem:[#allocation3 + $0x8] sm:$0xf] }
  0xee   :  { %v495_v22 = vmax.f32 %v394_v46, 0.0  ;;  %v509_v19 = vmax.f32 %v429_v47, 0.0  ;;  %v419_v46 = vadd.f32 %v3046_v26, %v3117_v37  ;;  %v507_v47 = vmax.f32 %v424_v5, 0.0 }
  0xef   :  { %v3210_v14 = vpack.c.bf16 %v522_v30, %v522_v30  ;;  %v492_v16 = vmax.f32 %v386_v17, 0.0  ;;  %v3251_v5 = vpack.c.bf16 %v493_v3, %v493_v3  ;;  %v374_v3 = vadd.f32 %v3046_v26, %v3077_v59 }
  0xf0   :  { %v505_v7 = vmax.f32 %v419_v46, 0.0  ;;  %v1180_v46 = vunpack.c.l.b16 %v3245_v35 }
  0xf1   :  { %3502 = vst [vmem:[#allocation19_spill] sm:$0xff] %v3210_v14  ;;  %v1194_v8 = vunpack.c.l.b16 %v3210_v14 }
  0xf3   :  { %v395_v30 = vpop.f32.mrf.mxu0  ;;  %v430_v45 = vpop.f32.mrf.mxu1  ;;  %v1222_v23 = vpack.c.b16 %v1194_v8, %v1193_v53  ;;  %v3238_v53 = vpack.c.bf16 %v495_v22, %v495_v22  ;;  %v3240_v8 = vpack.c.bf16 %v509_v19, %v509_v19  ;;  %v3253_v22 = vpack.c.bf16 %v507_v47, %v507_v47 }
  0xf4   :  { %v396_v31 = vadd.f32 %v3046_v26, %v395_v30  ;;  %v431_v24 = vadd.f32 %v3046_v26, %v430_v45  ;;  %v1221_v30 = vpack.c.b16 %v1192_v21, %v1191_v20  ;;  %v1190_v45 = vunpack.c.l.b16 %v3224_v33 }
  0xf5   :  { %1513 = vmatpush.bf16.msrb.mxu3 %v1222_v23  ;;  %v491_v23 = vmax.f32 %v384_v40, 0.0  ;;  %v1181_v48 = vunpack.c.l.b16 %v3240_v8  ;;  %v3260_v19 = vpack.c.bf16 %v492_v16, %v492_v16  ;;  %v1166_v40 = vunpack.c.l.b16 %v3243_v34  ;;  %v2745_v16 = vld [vmem:[#allocation3 + $0x10] sm:$0xf0] }
  0xf6   :  { %v496_v15 = vmax.f32 %v396_v31, 0.0  ;;  %v510_v55 = vmax.f32 %v431_v24, 0.0  ;;  %v1167_v24 = vunpack.c.l.b16 %v3238_v53  ;;  %v1220_v20 = vpack.c.b16 %v1190_v45, %v1189_v11 }
  0xf7   :  { %v409_v47 = vadd.f32 %v3046_v26, %v3079_v60  ;;  %v3272_v11 = vpack.c.bf16 %v491_v23, %v491_v23  ;;  %v1165_v45 = vunpack.c.l.b16 %v3251_v5  ;;  %v1179_v59 = vunpack.c.l.b16 %v3253_v22 }
  0xf8   :  { %v3247_v42 = vpack.c.bf16 %v496_v15, %v496_v15  ;;  %v3249_v37 = vpack.c.bf16 %v510_v55, %v510_v55  ;;  %v504_v15 = vmax.f32 %v3216_v54, 0.0  ;;  %v489_v55 = vmax.f32 %v3195_v28, 0.0 }
  0xf9   :  { %1514 = vmatpush.bf16.msrb.mxu3 %v1221_v30  ;;  %v503_v54 = vmax.f32 %v3199_v25, 0.0  ;;  %v3274_v30 = vpack.c.bf16 %v505_v7, %v505_v7  ;;  %v3504_v25 = vunpack.c.l.b16 %v3165_v56  ;;  %v3505_v23 = vunpack.c.l.b16 %v3179_v6 }
  0xfa   :  { %v1168_v17 = vunpack.c.l.b16 %v3247_v42  ;;  %v1182_v18 = vunpack.c.l.b16 %v3249_v37  ;;  %v3283_v28 = vpack.c.bf16 %v504_v15, %v504_v15  ;;  %v1164_v7 = vunpack.c.l.b16 %v3260_v19 }
  0xfb   :  { %v487_v15 = vmax.f32 %v374_v3, 0.0  ;;  %v3295_v41 = vpack.c.bf16 %v489_v55, %v489_v55  ;;  %v3297_v32 = vpack.c.bf16 %v503_v54, %v503_v54  ;;  %v3507_v3 = vmax.f32 %v3163_v12, 0.0 }
  0xfc   :  { %v1209_v21 = vpack.c.b16 %v1168_v17, %v1167_v24  ;;  %v1216_v31 = vpack.c.b16 %v1182_v18, %v1181_v48  ;;  %v3503_v24 = vmax.f32 %v3190_v49, 0.0  ;;  %v1219_v17 = vpack.c.b16 %v3505_v23, %v3504_v25 }
  0xfd   :  { %1515 = vmatpush.bf16.msrb.mxu3 %v1220_v20  ;;  %v1208_v48 = vpack.c.b16 %v1166_v40, %v1165_v45  ;;  %v1215_v18 = vpack.c.b16 %v1180_v46, %v1179_v59  ;;  %v1178_v20 = vunpack.c.l.b16 %v3262_v39  ;;  %v369_v49 = vadd.f32 %v3046_v26, %v3064_v43 }
  0xfe   :  { %1252 = vmatpush.bf16.msrb.mxu1 %v1209_v21  ;;  %1382 = vmatpush.bf16.msrb.mxu2 %v1216_v31  ;;  %v3281_v60 = vpack.c.bf16 %v3503_v24, %v3503_v24  ;;  %v2408_v21 = vor.u32 %v2745_v16, %v2407_v52  ;;  %v404_v31 = vadd.f32 %v3046_v26, %v3066_v44  ;;  %v501_v24 = vmax.f32 %v409_v47, 0.0 }
  0xff   :  { %v1163_v40 = vunpack.c.l.b16 %v3272_v11  ;;  %v1177_v46 = vunpack.c.l.b16 %v3274_v30  ;;  %v486_v52 = vmax.f32 %v3173_v61, 0.0  ;;  %v500_v43 = vmax.f32 %v3177_v62, 0.0 }
 0x100   :  { %v3506_v16 = vmax.f32 %v3159_v4, 0.0  ;;  %v3311_v47 = vpack.c.bf16 %v3507_v3, %v3507_v3  ;;  %v1162_v45 = vunpack.c.l.b16 %v3281_v60  ;;  %v1176_v59 = vunpack.c.l.b16 %v3283_v28  ;;  %v2419_v3 = vld [vmem:[#allocation3 + $0x20] sm:$0xf] }
 0x101   :  { %1516 = vmatpush.bf16.msrb.mxu3 %v1219_v17  ;;  %v1207_v55 = vpack.c.b16 %v1164_v7, %v1163_v40  ;;  %v1214_v54 = vpack.c.b16 %v1178_v20, %v1177_v46  ;;  %v364_v61 = vadd.f32 %v3046_v26, %v3048_v27  ;;  %v485_v62 = vmax.f32 %v369_v49, 0.0 }
 0x102   :  { %1253 = vmatpush.bf16.msrb.mxu1 %v1208_v48  ;;  %1383 = vmatpush.bf16.msrb.mxu2 %v1215_v18  ;;  %v3306_v44 = vpack.c.bf16 %v3506_v16, %v3506_v16  ;;  %v499_v4 = vmax.f32 %v404_v31, 0.0  ;;  %v3317_v25 = vpack.c.bf16 %v487_v15, %v487_v15  ;;  %v3319_v23 = vpack.c.bf16 %v501_v24, %v501_v24 }
 0x103   :  { %v1161_v12 = vunpack.c.l.b16 %v3295_v41  ;;  %v1175_v17 = vunpack.c.l.b16 %v3297_v32  ;;  %v484_v7 = vmax.f32 %v3169_v57, 0.0  ;;  %v3324_v48 = vpack.c.bf16 %v486_v52, %v486_v52 }
 0x104   :  { %1517 = vmatmul.bf16.vlgmr.msrb.gmra.mxu3 %v2408_v21  ;;  %v3326_v18 = vpack.c.bf16 %v500_v43, %v500_v43  ;;  %v1160_v27 = vunpack.c.l.b16 %v3306_v44  ;;  %v1174_v21 = vunpack.c.l.b16 %v3311_v47  ;;  %v483_v49 = vmax.f32 %v364_v61, 0.0  ;;  %v2743_v61 = vld [vmem:[#allocation3 + $0x4] sm:$0xf] }
 0x105   :  { %v1206_v20 = vpack.c.b16 %v1162_v45, %v1161_v12  ;;  %v1213_v26 = vpack.c.b16 %v1176_v59, %v1175_v17  ;;  %v3330_v31 = vpack.c.bf16 %v485_v62, %v485_v62  ;;  %v3332_v15 = vpack.c.bf16 %v499_v4, %v499_v4  ;;  %v2401_v62 = vld [vmem:[#allocation3 + $0xc] sm:$0xf0] }
 0x106   :  { %1254 = vmatpush.bf16.msrb.mxu1 %v1207_v55  ;;  %1384 = vmatpush.bf16.msrb.mxu2 %v1214_v54  ;;  %v1159_v24 = vunpack.c.l.b16 %v3317_v25  ;;  %v1173_v57 = vunpack.c.l.b16 %v3319_v23  ;;  %v3336_v40 = vpack.c.bf16 %v484_v7, %v484_v7  ;;  %v1158_v43 = vunpack.c.l.b16 %v3324_v48  ;;  %v2748_v55 = vld [vmem:[#allocation3 + $0x28] sm:$0xf0] }
 0x107   :  { %v1172_v16 = vunpack.c.l.b16 %v3326_v18  ;;  %v3340_v54 = vpack.c.bf16 %v483_v49, %v483_v49  ;;  %v1157_v45 = vunpack.c.l.b16 %v3330_v31  ;;  %v1171_v59 = vunpack.c.l.b16 %v3332_v15 }
 0x108   :  { %v1205_v46 = vpack.c.b16 %v1160_v27, %v1159_v24  ;;  %v1212_v52 = vpack.c.b16 %v1174_v21, %v1173_v57  ;;  %v1156_v17 = vunpack.c.l.b16 %v3336_v40  ;;  %v2420_v7 = vor.u32 %v2748_v55, %v2419_v3  ;;  %v2399_v27 = vld [vmem:[#allocation3] sm:$0xf]  ;;  %v2744_v21 = vld [vmem:[#allocation3 + $0x8] sm:$0xf0]  ;;  %v2431_v57 = vld [vmem:[#allocation3 + $0x38] sm:$0xf] }
 0x109   :  { %v1204_v4 = vpack.c.b16 %v1158_v43, %v1157_v45  ;;  %v1211_v12 = vpack.c.b16 %v1172_v16, %v1171_v59  ;;  %v2400_v24 = vor.u32 %v2744_v21, %v2399_v27  ;;  %v2413_v43 = vld [vmem:[#allocation3 + $0x24] sm:$0xf0]  ;;  %v2411_v3 = vld [vmem:[#allocation3 + $0x18] sm:$0xf]  ;;  %v2747_v55 = vld [vmem:[#allocation3 + $0x20] sm:$0xf0] }
 0x10a   :  { %1255 = vmatpush.bf16.msrb.mxu1 %v1206_v20  ;;  %1385 = vmatpush.bf16.msrb.mxu2 %v1213_v26  ;;  %v2404_v20 = vor.u32 %v2743_v61, %v2401_v62  ;;  %v1155_v26 = vunpack.c.l.b16 %v3340_v54  ;;  %v2412_v59 = vor.u32 %v2747_v55, %v2411_v3  ;;  %v2443_v61 = vld [vmem:[#allocation3 + $0x50] sm:$0xf]  ;;  %v2754_v62 = vld [vmem:[#allocation3 + $0x58] sm:$0xf0]  ;;  %v2455_v21 = vld [vmem:[#allocation3 + $0x68] sm:$0xf] }
 0x10b   :  { %v2467_v3 = vld [vmem:[#allocation3 + $0x80] sm:$0xf]  ;;  %v2760_v55 = vld [vmem:[#allocation3 + $0x88] sm:$0xf0] }
 0x10c   :  { %v1203_v49 = vpack.c.b16 %v1156_v17, %v1155_v26  ;;  %v2444_v17 = vor.u32 %v2754_v62, %v2443_v61  ;;  %v2750_v26 = vld [vmem:[#allocation3 + $0x38] sm:$0xf0]  ;;  %v2449_v61 = vld [vmem:[#allocation3 + $0x6c] sm:$0xf0]  ;;  %v2468_v62 = vor.u32 %v2760_v55, %v2467_v3 }
 0x10d   :  { %v2491_v3 = vld [vmem:[#allocation3 + $0xb0] sm:$0xf]  ;;  %v2766_v55 = vld [vmem:[#allocation3 + $0xb8] sm:$0xf0] }
 0x10e   :  { %1256 = vmatpush.bf16.msrb.mxu1 %v1205_v46  ;;  %1386 = vmatpush.bf16.msrb.mxu2 %v1212_v52  ;;  %v2751_v46 = vld [vmem:[#allocation3 + $0x40] sm:$0xf0]  ;;  %v2746_v52 = vld [vmem:[#allocation3 + $0x1c] sm:$0xf] }
 0x10f   :  { %v2432_v16 = vor.u32 %v2751_v46, %v2431_v57  ;;  %v2416_v45 = vor.u32 %v2746_v52, %v2413_v43  ;;  %v2437_v57 = vld [vmem:[#allocation3 + $0x54] sm:$0xf0]  ;;  %v2435_v43 = vld [vmem:[#allocation3 + $0x48] sm:$0xf] }
 0x112   :  { %1257 = vmatpush.bf16.msrb.mxu1 %v1204_v4  ;;  %1387 = vmatpush.bf16.msrb.mxu2 %v1211_v12  ;;  %v2749_v4 = vld [vmem:[#allocation3 + $0x34] sm:$0xf]  ;;  %v2425_v12 = vld [vmem:[#allocation3 + $0x3c] sm:$0xf0] }
 0x114   :  { %1522 = vmatmul.bf16.gmra.mxu3 %v2420_v7  ;;  %v2428_v7 = vor.u32 %v2749_v4, %v2425_v12  ;;  %v2447_v12 = vld [vmem:[#allocation3 + $0x60] sm:$0xf] }
 0x115   :  { %1388 = vmatmul.bf16.vlgmr.msrb.gmra.mxu2 %v2404_v20  ;;  %v2423_v20 = vld [vmem:[#allocation3 + $0x30] sm:$0xf] }
 0x116   :  { %1258 = vmatpush.bf16.msrb.mxu1 %v1203_v49  ;;  %v2424_v27 = vor.u32 %v2750_v26, %v2423_v20  ;;  %v2757_v49 = vld [vmem:[#allocation3 + $0x70] sm:$0xf0]  ;;  %v2479_v20 = vld [vmem:[#allocation3 + $0x98] sm:$0xf]  ;;  %v2763_v26 = vld [vmem:[#allocation3 + $0xa0] sm:$0xf0] }
 0x117   :  { %v2456_v46 = vor.u32 %v2757_v49, %v2455_v21  ;;  %v2461_v21 = vld [vmem:[#allocation3 + $0x84] sm:$0xf0]  ;;  %v2480_v49 = vor.u32 %v2763_v26, %v2479_v20  ;;  %v2819_v20 = vld [vmem:[%s3478_s4 + $0x20] sm:$0xff]  ;;  %v2818_v26 = vld [vmem:[%s3478_s4 + $0x18] sm:$0xff] }
 0x119   :  { %1259 = vmatmul.bf16.vlgmr.msrb.gmra.mxu1 %v2400_v24  ;;  %v2752_v24 = vld [vmem:[#allocation3 + $0x4c] sm:$0xf] }
 0x11a   :  { %v2440_v52 = vor.u32 %v2752_v24, %v2437_v57  ;;  %v2459_v57 = vld [vmem:[#allocation3 + $0x78] sm:$0xf] }
 0x124   :  { %1527 = vmatmul.bf16.gmra.mxu3 %v2432_v16  ;;  %v2753_v16 = vld [vmem:[#allocation3 + $0x50] sm:$0xf0] }
 0x125   :  { %1393 = vmatmul.bf16.gmra.mxu2 %v2416_v45  ;;  %v2436_v45 = vor.u32 %v2753_v16, %v2435_v43  ;;  %v2822_v43 = vld [vmem:[%s3478_s4 + $0x38] sm:$0xff]  ;;  %v2821_v16 = vld [vmem:[%s3478_s4 + $0x30] sm:$0xff] }
 0x126   :  { %2073 = vmatpush.bf16.msrb.mxu0 %v2822_v43  ;;  %2829 = vmatpush.bf16.msra.mxu3 %v2822_v43  ;;  %v2816_v43 = vld [vmem:[%s3478_s4 + $0x8] sm:$0xff] }
 0x129   :  { %1264 = vmatmul.bf16.gmra.mxu1 %v2412_v59  ;;  %v2755_v59 = vld [vmem:[#allocation3 + $0x64] sm:$0xf] }
 0x12a   :  { %v2452_v4 = vor.u32 %v2755_v59, %v2449_v61  ;;  %2074 = vmatpush.bf16.msrb.mxu0 %v2821_v16  ;;  %2830 = vmatpush.bf16.msra.mxu3 %v2821_v16  ;;  %v2761_v59 = vld [vmem:[#allocation3 + $0x94] sm:$0xf]  ;;  %v2473_v61 = vld [vmem:[#allocation3 + $0x9c] sm:$0xf0]  ;;  %v2483_v16 = vld [vmem:[#allocation3 + $0xa8] sm:$0xf] }
 0x134   :  { %1532 = vmatmul.bf16.gmra.mxu3 %v2444_v17  ;;  %v2756_v17 = vld [vmem:[#allocation3 + $0x68] sm:$0xf0] }
 0x135   :  { %1398 = vmatmul.bf16.gmra.mxu2 %v2428_v7  ;;  %v2448_v7 = vor.u32 %v2756_v17, %v2447_v12  ;;  %v2471_v12 = vld [vmem:[#allocation3 + $0x90] sm:$0xf]  ;;  %v2762_v17 = vld [vmem:[#allocation3 + $0x98] sm:$0xf0] }
 0x139   :  { %1269 = vmatmul.bf16.gmra.mxu1 %v2424_v27  ;;  %v2758_v27 = vld [vmem:[#allocation3 + $0x7c] sm:$0xf] }
 0x13a   :  { %v2464_v24 = vor.u32 %v2758_v27, %v2461_v21  ;;  %v2503_v27 = vld [vmem:[#allocation3 + $0xc8] sm:$0xf]  ;;  %v2769_v21 = vld [vmem:[#allocation3 + $0xd0] sm:$0xf0] }
 0x144   :  { %1537 = vmatmul.bf16.gmra.mxu3 %v2456_v46  ;;  %v2759_v46 = vld [vmem:[#allocation3 + $0x80] sm:$0xf0] }
 0x145   :  { %1403 = vmatmul.bf16.gmra.mxu2 %v2440_v52  ;;  %v2460_v52 = vor.u32 %v2759_v46, %v2459_v57  ;;  %v2485_v57 = vld [vmem:[#allocation3 + $0xb4] sm:$0xf0]  ;;  %v2504_v46 = vor.u32 %v2769_v21, %v2503_v27  ;;  %v2768_v27 = vld [vmem:[#allocation3 + $0xc8] sm:$0xf0] }
 0x149   :  { %1274 = vmatmul.bf16.gmra.mxu1 %v2436_v45  ;;  %v2820_v45 = vld [vmem:[%s3478_s4 + $0x28] sm:$0xff] }
 0x14a   :  { %2075 = vmatpush.bf16.msrb.mxu0 %v2820_v45  ;;  %2831 = vmatpush.bf16.msra.mxu3 %v2820_v45  ;;  %v2765_v45 = vld [vmem:[#allocation3 + $0xb0] sm:$0xf0] }
 0x14e   :  { %2076 = vmatpush.bf16.msrb.mxu0 %v2819_v20  ;;  %2832 = vmatpush.bf16.msra.mxu3 %v2819_v20 }
 0x152   :  { %2077 = vmatpush.bf16.msrb.mxu0 %v2818_v26  ;;  %2833 = vmatpush.bf16.msra.mxu3 %v2818_v26  ;;  %v2495_v26 = vld [vmem:[#allocation3 + $0xc0] sm:$0xf] }
 0x153   :  { %v2496_v21 = vor.u32 %v2768_v27, %v2495_v26  ;;  %v1787_v26 = vunpack.c.l.bf16 %v3336_v40 }
 0x154   :  { %1542 = vmatmul.bf16.gmra.mxu3 %v2468_v62  ;;  %v2492_v62 = vor.u32 %v2766_v55, %v2491_v3  ;;  %v2484_v3 = vor.u32 %v2765_v45, %v2483_v16  ;;  %v2815_v55 = vld [vmem:[%s3478_s4] sm:$0xff]  ;;  %v2770_v45 = vld [vmem:[#allocation3 + $0xdc] sm:$0xf] }
 0x155   :  { %1408 = vmatmul.bf16.gmra.mxu2 %v2452_v4  ;;  %v2476_v4 = vor.u32 %v2761_v59, %v2473_v61  ;;  %v2515_v61 = vld [vmem:[#allocation3 + $0xe0] sm:$0xf] }
 0x159   :  { %1279 = vmatmul.bf16.gmra.mxu1 %v2448_v7  ;;  %v2472_v7 = vor.u32 %v2762_v17, %v2471_v12  ;;  %v2497_v12 = vld [vmem:[#allocation3 + $0xcc] sm:$0xf0] }
 0x164   :  { %1547 = vmatmul.bf16.gmra.mxu3 %v2480_v49  ;;  %v2817_v49 = vld [vmem:[%s3478_s4 + $0x10] sm:$0xff] }
 0x165   :  { %1413 = vmatmul.bf16.gmra.mxu2 %v2464_v24  ;;  %v2764_v24 = vld [vmem:[#allocation3 + $0xac] sm:$0xf]  ;;  %2078 = vmatpush.bf16.msrb.mxu0 %v2817_v49 }
 0x166   :  { %2834 = vmatpush.bf16.msra.mxu3 %v2817_v49 }
 0x169   :  { %1284 = vmatmul.bf16.gmra.mxu1 %v2460_v52  ;;  %v2488_v52 = vor.u32 %v2764_v24, %v2485_v57  ;;  %2079 = vmatpush.bf16.msrb.mxu0 %v2816_v43 }
 0x16a   :  { %2835 = vmatpush.bf16.msra.mxu3 %v2816_v43  ;;  %v2775_v43 = vld [vmem:[#allocation3 + $0x100] sm:$0xf0] }
 0x16d   :  { %2080 = vmatpush.bf16.msrb.mxu0 %v2815_v55 }
 0x16e   :  { %2836 = vmatpush.bf16.msra.mxu3 %v2815_v55 }
 0x174   :  { %1552 = vmatmul.bf16.gmra.mxu3 %v2492_v62  ;;  %v2772_v62 = vld [vmem:[#allocation3 + $0xe8] sm:$0xf0] }
 0x175   :  { %1418 = vmatmul.bf16.gmra.mxu2 %v2476_v4  ;;  %v2767_v4 = vld [vmem:[#allocation3 + $0xc4] sm:$0xf] }
 0x176   :  { %v2500_v20 = vor.u32 %v2767_v4, %v2497_v12  ;;  %v2507_v12 = vld [vmem:[#allocation3 + $0xd8] sm:$0xf] }
 0x179   :  { %1289 = vmatmul.bf16.gmra.mxu1 %v2472_v7  ;;  %v2516_v7 = vor.u32 %v2772_v62, %v2515_v61 }
 0x184   :  { %1557 = vmatmul.bf16.gmra.mxu3 %v2504_v46 }
 0x185   :  { %1423 = vmatmul.bf16.gmra.mxu2 %v2488_v52  ;;  %v2527_v52 = vld [vmem:[#allocation3 + $0xf8] sm:$0xf] }
 0x186   :  { %v2528_v10 = vor.u32 %v2775_v43, %v2527_v52  ;;  %v2773_v43 = vld [vmem:[#allocation3 + $0xf4] sm:$0xf] }
 0x187   :  { %v1518_v59 = vpop.f32.mrf.mxu3 }
 0x189   :  { %1294 = vmatmul.bf16.gmra.mxu1 %v2484_v3  ;;  %v2509_v3 = vld [vmem:[#allocation3 + $0xe4] sm:$0xf0] }
 0x18a   :  { %v2512_v4 = vor.u32 %v2770_v45, %v2509_v3 }
 0x18f   :  { %v1520_v17 = vpop.f32.mrf.mxu3 }
 0x194   :  { %1562 = vmatmul.bf16.gmra.mxu3 %v2516_v7  ;;  %v2771_v7 = vld [vmem:[#allocation3 + $0xe0] sm:$0xf0] }
 0x195   :  { %1428 = vmatmul.bf16.gmra.mxu2 %v2500_v20  ;;  %v1786_v20 = vunpack.c.l.bf16 %v3340_v54  ;;  %v2521_v54 = vld [vmem:[#allocation3 + $0xfc] sm:$0xf0] }
 0x196   :  { %v1260_v49 = vpop.f32.mrf.mxu1  ;;  %v2524_v3 = vor.u32 %v2773_v43, %v2521_v54 }
 0x197   :  { %v1523_v24 = vpop.f32.mrf.mxu3 }
 0x198   :  { %v1389_v57 = vpop.f32.mrf.mxu2 }
 0x199   :  { %1299 = vmatmul.bf16.gmra.mxu1 %v2496_v21  ;;  %v1390_v46 = vadd.f32 %v1389_v57, %v1260_v49  ;;  %v2508_v57 = vor.u32 %v2771_v7, %v2507_v12  ;;  %v1789_v12 = vunpack.c.l.bf16 %v3324_v48 }
 0x19b   :  { %v1519_v61 = vadd.f32 %v1518_v59, %v1390_v46  ;;  %v2539_v59 = vld [vmem:[#allocation3 + $0x110] sm:$0xf]  ;;  %v2778_v46 = vld [vmem:[#allocation3 + $0x118] sm:$0xf0] }
 0x19d   :  { %v1834_v21 = vadd.f32 %v1786_v20, %v1519_v61  ;;  %v2519_v61 = vld [vmem:[#allocation3 + $0xf0] sm:$0xf] }
 0x19e   :  { %v1262_v16 = vpop.f32.mrf.mxu1 }
 0x19f   :  { %v1525_v55 = vpop.f32.mrf.mxu3 }
 0x1a0   :  { %v1391_v2 = vpop.f32.mrf.mxu2 }
 0x1a1   :  { %v1392_v62 = vadd.f32 %v1391_v2, %v1262_v16 }
 0x1a3   :  { %v1521_v27 = vadd.f32 %v1520_v17, %v1392_v62  ;;  %v2540_v17 = vor.u32 %v2778_v46, %v2539_v59  ;;  %v2774_v62 = vld [vmem:[#allocation3 + $0xf8] sm:$0xf0]  ;;  %v2776_v59 = vld [vmem:[#allocation3 + $0x10c] sm:$0xf] }
 0x1a4   :  { %1567 = vmatmul.bf16.gmra.mxu3 %v2528_v10  ;;  %v2520_v7 = vor.u32 %v2774_v62, %v2519_v61 }
 0x1a5   :  { %v1835_v49 = vadd.f32 %v1787_v26, %v1521_v27  ;;  %1433 = vmatmul.bf16.gmra.mxu2 %v2512_v4  ;;  %v1788_v4 = vunpack.c.l.bf16 %v3330_v31  ;;  %v2533_v31 = vld [vmem:[#allocation3 + $0x114] sm:$0xf0] }
 0x1a6   :  { %v1265_v9 = vpop.f32.mrf.mxu1  ;;  %v2536_v54 = vor.u32 %v2776_v59, %v2533_v31  ;;  %v2543_v59 = vld [vmem:[#allocation3 + $0x120] sm:$0xf]  ;;  %v2780_v31 = vld [vmem:[#allocation3 + $0x128] sm:$0xf0] }
 0x1a7   :  { %v1981_v14 = vpack.c.bf16 %v1835_v49, %v1834_v21  ;;  %v1528_v13 = vpop.f32.mrf.mxu3  ;;  %v2551_v49 = vld [vmem:[#allocation3 + $0x128] sm:$0xf] }
 0x1a8   :  { %v1394_v51 = vpop.f32.mrf.mxu2 }
 0x1a9   :  { %2081 = vmatmul.bf16.vlgmr.msrb.gmra.mxu0 %v1981_v14  ;;  %1304 = vmatmul.bf16.gmra.mxu1 %v2508_v57  ;;  %v1395_v2 = vadd.f32 %v1394_v51, %v1265_v9  ;;  %v2781_v57 = vld [vmem:[#allocation3 + $0x130] sm:$0xf0] }
 0x1ab   :  { %v1524_v10 = vadd.f32 %v1523_v24, %v1395_v2 }
 0x1ad   :  { %v1836_v9 = vadd.f32 %v1788_v4, %v1524_v10  ;;  %v1790_v10 = vunpack.c.l.bf16 %v3317_v25  ;;  %v2545_v25 = vld [vmem:[#allocation3 + $0x12c] sm:$0xf0] }
 0x1ae   :  { %v1267_v52 = vpop.f32.mrf.mxu1 }
 0x1af   :  { %v1530_v16 = vpop.f32.mrf.mxu3 }
 0x1b0   :  { %v1396_v40 = vpop.f32.mrf.mxu2 }
 0x1b1   :  { %v1397_v45 = vadd.f32 %v1396_v40, %v1267_v52  ;;  %v2531_v40 = vld [vmem:[#allocation3 + $0x108] sm:$0xf] }
 0x1b3   :  { %v1526_v14 = vadd.f32 %v1525_v55, %v1397_v45  ;;  %v2552_v55 = vor.u32 %v2781_v57, %v2551_v49  ;;  %v1791_v45 = vunpack.c.l.bf16 %v3306_v44 }
 0x1b4   :  { %1572 = vmatmul.bf16.gmra.mxu3 %v2540_v17  ;;  %v2777_v17 = vld [vmem:[#allocation3 + $0x110] sm:$0xf0] }
 0x1b5   :  { %1438 = vmatmul.bf16.gmra.mxu2 %v2524_v3  ;;  %v1837_v51 = vadd.f32 %v1789_v12, %v1526_v14  ;;  %v2532_v4 = vor.u32 %v2777_v17, %v2531_v40  ;;  %v2544_v40 = vor.u32 %v2780_v31, %v2543_v59 }
 0x1b6   :  { %v1270_v20 = vpop.f32.mrf.mxu1 }
 0x1b7   :  { %v1982_v26 = vpack.c.bf16 %v1837_v51, %v1836_v9  ;;  %v1533_v27 = vpop.f32.mrf.mxu3 }
 0x1b8   :  { %v1399_v21 = vpop.f32.mrf.mxu2 }
 0x1b9   :  { %2086 = vmatmul.bf16.gmra.mxu0 %v1982_v26  ;;  %1309 = vmatmul.bf16.gmra.mxu1 %v2520_v7  ;;  %v1400_v24 = vadd.f32 %v1399_v21, %v1270_v20  ;;  %v2563_v7 = vld [vmem:[#allocation3 + $0x140] sm:$0xf]  ;;  %v2784_v20 = vld [vmem:[#allocation3 + $0x148] sm:$0xf0]  ;;  %v2779_v21 = vld [vmem:[#allocation3 + $0x124] sm:$0xf] }
 0x1bb   :  { %v1529_v52 = vadd.f32 %v1528_v13, %v1400_v24 }
 0x1bd   :  { %v1838_v61 = vadd.f32 %v1790_v10, %v1529_v52 }
 0x1be   :  { %v1272_v2 = vpop.f32.mrf.mxu1 }
 0x1bf   :  { %v1535_v46 = vpop.f32.mrf.mxu3 }
 0x1c0   :  { %v1401_v48 = vpop.f32.mrf.mxu2 }
 0x1c1   :  { %v1402_v43 = vadd.f32 %v1401_v48, %v1272_v2  ;;  %v2548_v2 = vor.u32 %v2779_v21, %v2545_v25  ;;  %v1792_v48 = vunpack.c.l.bf16 %v3295_v41  ;;  %v2557_v41 = vld [vmem:[#allocation3 + $0x144] sm:$0xf0]  ;;  %v1794_v21 = vunpack.c.l.bf16 %v3272_v11  ;;  %v2569_v11 = vld [vmem:[#allocation3 + $0x15c] sm:$0xf0] }
 0x1c2   :  { %v1795_v25 = vunpack.c.l.bf16 %v3260_v19 }
 0x1c3   :  { %v1531_v3 = vadd.f32 %v1530_v16, %v1402_v43  ;;  %v2564_v16 = vor.u32 %v2784_v20, %v2563_v7  ;;  %v2555_v20 = vld [vmem:[#allocation3 + $0x138] sm:$0xf] }
 0x1c4   :  { %1577 = vmatmul.bf16.gmra.mxu3 %v2552_v55  ;;  %v1793_v55 = vunpack.c.l.bf16 %v3281_v60 }
 0x1c5   :  { %1443 = vmatmul.bf16.gmra.mxu2 %v2536_v54  ;;  %v1839_v62 = vadd.f32 %v1791_v45, %v1531_v3 }
 0x1c6   :  { %v1275_v12 = vpop.f32.mrf.mxu1 }
 0x1c7   :  { %v1983_v14 = vpack.c.bf16 %v1839_v62, %v1838_v61  ;;  %v1538_v9 = vpop.f32.mrf.mxu3  ;;  %v2575_v61 = vld [vmem:[#allocation3 + $0x158] sm:$0xf]  ;;  %v2787_v62 = vld [vmem:[#allocation3 + $0x160] sm:$0xf0] }
 0x1c8   :  { %v1404_v51 = vpop.f32.mrf.mxu2 }
 0x1c9   :  { %2091 = vmatmul.bf16.gmra.mxu0 %v1983_v14  ;;  %1314 = vmatmul.bf16.gmra.mxu1 %v2532_v4  ;;  %v1405_v13 = vadd.f32 %v1404_v51, %v1275_v12  ;;  %v2782_v12 = vld [vmem:[#allocation3 + $0x13c] sm:$0xf] }
 0x1ca   :  { %v2560_v7 = vor.u32 %v2782_v12, %v2557_v41 }
 0x1cb   :  { %v1534_v49 = vadd.f32 %v1533_v27, %v1405_v13 }
 0x1cd   :  { %v1840_v43 = vadd.f32 %v1792_v48, %v1534_v49 }
 0x1ce   :  { %v1277_v26 = vpop.f32.mrf.mxu1 }
 0x1cf   :  { %v1540_v24 = vpop.f32.mrf.mxu3 }
 0x1d0   :  { %v1406_v44 = vpop.f32.mrf.mxu2 }
 0x1d1   :  { %v1407_v57 = vadd.f32 %v1406_v44, %v1277_v26  ;;  %v2783_v26 = vld [vmem:[#allocation3 + $0x140] sm:$0xf0] }
 0x1d3   :  { %v1536_v52 = vadd.f32 %v1535_v46, %v1407_v57  ;;  %v2576_v46 = vor.u32 %v2787_v62, %v2575_v61  ;;  %v2556_v57 = vor.u32 %v2783_v26, %v2555_v20  ;;  %v2786_v61 = vld [vmem:[#allocation3 + $0x158] sm:$0xf0]  ;;  %v1796_v62 = vunpack.c.l.bf16 %v3251_v5  ;;  %v2599_v26 = vld [vmem:[#allocation3 + $0x188] sm:$0xf]  ;;  %v2581_v5 = vld [vmem:[#allocation3 + $0x174] sm:$0xf0] }
 0x1d4   :  { %1582 = vmatmul.bf16.gmra.mxu3 %v2564_v16 }
 0x1d5   :  { %1448 = vmatmul.bf16.gmra.mxu2 %v2548_v2  ;;  %v1841_v54 = vadd.f32 %v1793_v55, %v1536_v52  ;;  %v2587_v55 = vld [vmem:[#allocation3 + $0x170] sm:$0xf]  ;;  %v2790_v52 = vld [vmem:[#allocation3 + $0x178] sm:$0xf0] }
 0x1d6   :  { %v1280_v17 = vpop.f32.mrf.mxu1 }
 0x1d7   :  { %v1984_v10 = vpack.c.bf16 %v1841_v54, %v1840_v43  ;;  %v1543_v45 = vpop.f32.mrf.mxu3  ;;  %v2785_v54 = vld [vmem:[#allocation3 + $0x154] sm:$0xf] }
 0x1d8   :  { %v1409_v3 = vpop.f32.mrf.mxu2 }
 0x1d9   :  { %2096 = vmatmul.bf16.gmra.mxu0 %v1984_v10  ;;  %1319 = vmatmul.bf16.gmra.mxu1 %v2544_v40  ;;  %v1410_v27 = vadd.f32 %v1409_v3, %v1280_v17  ;;  %v2572_v3 = vor.u32 %v2785_v54, %v2569_v11 }
 0x1db   :  { %v1539_v51 = vadd.f32 %v1538_v9, %v1410_v27  ;;  %v2567_v27 = vld [vmem:[#allocation3 + $0x150] sm:$0xf] }
 0x1dd   :  { %v1842_v16 = vadd.f32 %v1794_v21, %v1539_v51  ;;  %v2793_v21 = vld [vmem:[#allocation3 + $0x190] sm:$0xf0] }
 0x1de   :  { %v1282_v4 = vpop.f32.mrf.mxu1 }
 0x1df   :  { %v1545_v14 = vpop.f32.mrf.mxu3 }
 0x1e0   :  { %v1411_v60 = vpop.f32.mrf.mxu2 }
 0x1e1   :  { %v1412_v13 = vadd.f32 %v1411_v60, %v1282_v4  ;;  %v1797_v4 = vunpack.c.l.bf16 %v3243_v34 }
 0x1e3   :  { %v1541_v44 = vadd.f32 %v1540_v24, %v1412_v13  ;;  %v2588_v24 = vor.u32 %v2790_v52, %v2587_v55  ;;  %v1799_v55 = vunpack.c.l.bf16 %v3247_v42 }
 0x1e4   :  { %1587 = vmatmul.bf16.gmra.mxu3 %v2576_v46  ;;  %v2568_v46 = vor.u32 %v2786_v61, %v2567_v27  ;;  %v2796_v27 = vld [vmem:[#allocation3 + $0x1a8] sm:$0xf0] }
 0x1e5   :  { %1453 = vmatmul.bf16.gmra.mxu2 %v2560_v7  ;;  %v1843_v49 = vadd.f32 %v1795_v25, %v1541_v44  ;;  %v2788_v44 = vld [vmem:[#allocation3 + $0x16c] sm:$0xf] }
 0x1e6   :  { %v1285_v2 = vpop.f32.mrf.mxu1 }
 0x1e7   :  { %v1985_v59 = vpack.c.bf16 %v1843_v49, %v1842_v16  ;;  %v1548_v31 = vpop.f32.mrf.mxu3 }
 0x1e8   :  { %v1414_v48 = vpop.f32.mrf.mxu2 }
 0x1e9   :  { %2101 = vmatmul.bf16.gmra.mxu0 %v1985_v59  ;;  %1324 = vmatmul.bf16.gmra.mxu1 %v2556_v57  ;;  %v1415_v9 = vadd.f32 %v1414_v48, %v1285_v2  ;;  %v2584_v2 = vor.u32 %v2788_v44, %v2581_v5  ;;  %v2579_v59 = vld [vmem:[#allocation3 + $0x168] sm:$0xf]  ;;  %v2789_v48 = vld [vmem:[#allocation3 + $0x170] sm:$0xf0] }
 0x1ea   :  { %v2580_v11 = vor.u32 %v2789_v48, %v2579_v59  ;;  %v2794_v59 = vld [vmem:[#allocation3 + $0x19c] sm:$0xf] }
 0x1eb   :  { %v1544_v17 = vadd.f32 %v1543_v45, %v1415_v9  ;;  %v1798_v9 = vunpack.c.l.bf16 %v3238_v53  ;;  %v2593_v53 = vld [vmem:[#allocation3 + $0x18c] sm:$0xf0] }
 0x1ed   :  { %v1844_v41 = vadd.f32 %v1796_v62, %v1544_v17  ;;  %v2791_v62 = vld [vmem:[#allocation3 + $0x184] sm:$0xf] }
 0x1ee   :  { %v1287_v43 = vpop.f32.mrf.mxu1 }
 0x1ef   :  { %v1550_v40 = vpop.f32.mrf.mxu3 }
 0x1f0   :  { %v1416_v19 = vpop.f32.mrf.mxu2 }
 0x1f1   :  { %v1417_v10 = vadd.f32 %v1416_v19, %v1287_v43 }
 0x1f3   :  { %v1546_v12 = vadd.f32 %v1545_v14, %v1417_v10  ;;  %v2600_v14 = vor.u32 %v2793_v21, %v2599_v26 }
 0x1f4   :  { %1592 = vmatmul.bf16.gmra.mxu3 %v2588_v24 }
 0x1f5   :  { %v1845_v60 = vadd.f32 %v1797_v4, %v1546_v12  ;;  %1458 = vmatmul.bf16.gmra.mxu2 %v2572_v3  ;;  %v2611_v3 = vld [vmem:[#allocation3 + $0x1a0] sm:$0xf] }
 0x1f6   :  { %v1290_v51 = vpop.f32.mrf.mxu1 }
 0x1f7   :  { %v1986_v13 = vpack.c.bf16 %v1845_v60, %v1844_v41  ;;  %v1553_v7 = vpop.f32.mrf.mxu3  ;;  %v2596_v60 = vor.u32 %v2791_v62, %v2593_v53 }
 0x1f8   :  { %v1419_v20 = vpop.f32.mrf.mxu2 }
 0x1f9   :  { %2106 = vmatmul.bf16.gmra.mxu0 %v1986_v13  ;;  %1329 = vmatmul.bf16.gmra.mxu1 %v2568_v46  ;;  %v1420_v45 = vadd.f32 %v1419_v20, %v1290_v51  ;;  %v2591_v46 = vld [vmem:[#allocation3 + $0x180] sm:$0xf]  ;;  %v2792_v51 = vld [vmem:[#allocation3 + $0x188] sm:$0xf0]  ;;  %v1800_v13 = vunpack.c.l.bf16 %v3056_v36  ;;  %v1801_v20 = vunpack.c.l.bf16 %v3058_v38  ;;  %v2605_v36 = vld [vmem:[#allocation3 + $0x1a4] sm:$0xf0] }
 0x1fb   :  { %v1549_v49 = vadd.f32 %v1548_v31, %v1420_v45 }
 0x1fd   :  { %v1846_v43 = vadd.f32 %v1798_v9, %v1549_v49  ;;  %v2623_v49 = vld [vmem:[#allocation3 + $0x1b8] sm:$0xf] }
 0x1fe   :  { %v1292_v25 = vpop.f32.mrf.mxu1 }
 0x1ff   :  { %v1555_v16 = vpop.f32.mrf.mxu3 }
 0x200   :  { %v1421_v34 = vpop.f32.mrf.mxu2 }
 0x201   :  { %v1422_v57 = vadd.f32 %v1421_v34, %v1292_v25  ;;  %v2592_v25 = vor.u32 %v2792_v51, %v2591_v46  ;;  %v2617_v46 = vld [vmem:[#allocation3 + $0x1bc] sm:$0xf0] }
 0x203   :  { %v1551_v52 = vadd.f32 %v1550_v40, %v1422_v57  ;;  %v2612_v40 = vor.u32 %v2796_v27, %v2611_v3  ;;  %v2799_v57 = vld [vmem:[#allocation3 + $0x1c0] sm:$0xf0] }
 0x204   :  { %1597 = vmatmul.bf16.gmra.mxu3 %v2600_v14 }
 0x205   :  { %v1847_v54 = vadd.f32 %v1799_v55, %v1551_v52  ;;  %1463 = vmatmul.bf16.gmra.mxu2 %v2584_v2  ;;  %v2608_v52 = vor.u32 %v2794_v59, %v2605_v36 }
 0x206   :  { %v1295_v19 = vpop.f32.mrf.mxu1 }
 0x207   :  { %v1987_v24 = vpack.c.bf16 %v1847_v54, %v1846_v43  ;;  %v1558_v17 = vpop.f32.mrf.mxu3  ;;  %v2603_v43 = vld [vmem:[#allocation3 + $0x198] sm:$0xf]  ;;  %v2795_v54 = vld [vmem:[#allocation3 + $0x1a0] sm:$0xf0] }
 0x208   :  { %v1424_v10 = vpop.f32.mrf.mxu2  ;;  %v2604_v27 = vor.u32 %v2795_v54, %v2603_v43  ;;  %v2805_v43 = vld [vmem:[#allocation3 + $0x1f0] sm:$0xf0]  ;;  %v2800_v54 = vld [vmem:[#allocation3 + $0x1cc] sm:$0xf] }
 0x209   :  { %2111 = vmatmul.bf16.gmra.mxu0 %v1987_v24  ;;  %1334 = vmatmul.bf16.gmra.mxu1 %v2580_v11  ;;  %v1425_v31 = vadd.f32 %v1424_v10, %v1295_v19  ;;  %v1802_v11 = vunpack.c.l.bf16 %v3332_v15  ;;  %v1803_v19 = vunpack.c.l.bf16 %v3326_v18  ;;  %v3391_v10 = vld [vmem:[%s3479_s5] ss:$0 sm:$0xff]  ;;  %s2900_s5 = smov [#allocation6]  }
 0x20a   :  { %s2254_s19 = sshll.u32 %s2900_s5, 4  ;;  %s2255_s19 = int_to_ptr.vmem [resolvable:$true] %s2254_s19 }
 0x20b   :  { %v1554_v12 = vadd.f32 %v1553_v7, %v1425_v31 }
 0x20d   :  { %v1848_v26 = vadd.f32 %v1800_v13, %v1554_v12 }
 0x20e   :  { %v1297_v61 = vpop.f32.mrf.mxu1 }
 0x20f   :  { %v1560_v4 = vpop.f32.mrf.mxu3 }
 0x210   :  { %v1426_v42 = vpop.f32.mrf.mxu2 }
 0x211   :  { %v1427_v41 = vadd.f32 %v1426_v42, %v1297_v61 }
 0x213   :  { %v1556_v45 = vadd.f32 %v1555_v16, %v1427_v41  ;;  %v2624_v16 = vor.u32 %v2799_v57, %v2623_v49 }
 0x214   :  { %1602 = vmatmul.bf16.gmra.mxu3 %v2612_v40  ;;  %v2802_v40 = vld [vmem:[#allocation3 + $0x1d8] sm:$0xf0] }
 0x215   :  { %v1849_v21 = vadd.f32 %v1801_v20, %v1556_v45  ;;  %1468 = vmatmul.bf16.gmra.mxu2 %v2596_v60  ;;  %v2797_v60 = vld [vmem:[#allocation3 + $0x1b4] sm:$0xf] }
 0x216   :  { %v1300_v44 = vpop.f32.mrf.mxu1 }
 0x217   :  { %v1988_v5 = vpack.c.bf16 %v1849_v21, %v1848_v26  ;;  %v1563_v34 = vpop.f32.mrf.mxu3 }
 0x218   :  { %v1429_v14 = vpop.f32.mrf.mxu2 }
 0x219   :  { %2116 = vmatmul.bf16.gmra.mxu0 %v1988_v5  ;;  %1339 = vmatmul.bf16.gmra.mxu1 %v2592_v25  ;;  %v1430_v7 = vadd.f32 %v1429_v14, %v1300_v44  ;;  %v2620_v25 = vor.u32 %v2797_v60, %v2617_v46  ;;  %v2615_v44 = vld [vmem:[#allocation3 + $0x1b0] sm:$0xf]  ;;  %v2798_v5 = vld [vmem:[#allocation3 + $0x1b8] sm:$0xf0]  ;;  %v1804_v14 = vunpack.c.l.bf16 %v3319_v23  ;;  %v2647_v23 = vld [vmem:[#allocation3 + $0x1e8] sm:$0xf] }
 0x21a   :  { %v2616_v59 = vor.u32 %v2798_v5, %v2615_v44  ;;  %v2641_v44 = vld [vmem:[#allocation3 + $0x1ec] sm:$0xf0] }
 0x21b   :  { %v1559_v9 = vadd.f32 %v1558_v17, %v1430_v7  ;;  %v1805_v7 = vunpack.c.l.bf16 %v3311_v47 }
 0x21d   :  { %v1850_v31 = vadd.f32 %v1802_v11, %v1559_v9  ;;  %v2629_v11 = vld [vmem:[#allocation3 + $0x1d4] sm:$0xf0] }
 0x21e   :  { %v1302_v2 = vpop.f32.mrf.mxu1 }
 0x21f   :  { %v1565_v48 = vpop.f32.mrf.mxu3 }
 0x220   :  { %v1431_v38 = vpop.f32.mrf.mxu2 }
 0x221   :  { %v1432_v55 = vadd.f32 %v1431_v38, %v1302_v2 }
 0x223   :  { %v1561_v24 = vadd.f32 %v1560_v4, %v1432_v55  ;;  %v2635_v4 = vld [vmem:[#allocation3 + $0x1d0] sm:$0xf] }
 0x224   :  { %1607 = vmatmul.bf16.gmra.mxu3 %v2624_v16  ;;  %v2636_v45 = vor.u32 %v2802_v40, %v2635_v4 }
 0x225   :  { %v1851_v3 = vadd.f32 %v1803_v19, %v1561_v24  ;;  %1473 = vmatmul.bf16.gmra.mxu2 %v2608_v52 }
 0x226   :  { %v2082_v17 = vpop.f32.mrf.mxu0  ;;  %v1305_v61 = vpop.f32.mrf.mxu1 }
 0x227   :  { %v2083_v62 = vadd.f32 %v3391_v10, %v2082_v17  ;;  %v1989_v53 = vpack.c.bf16 %v1851_v3, %v1850_v31  ;;  %v1568_v42 = vpop.f32.mrf.mxu3  ;;  %v2648_v3 = vor.u32 %v2805_v43, %v2647_v23 }
 0x228   :  { %v1434_v15 = vpop.f32.mrf.mxu2 }
 0x229   :  { %2202 = vst [vmem:[#allocation6] sm:$0xff] %v2083_v62  ;;  %2121 = vmatmul.bf16.gmra.mxu0 %v1989_v53  ;;  %1344 = vmatmul.bf16.gmra.mxu1 %v2604_v27  ;;  %v1435_v18 = vadd.f32 %v1434_v15, %v1305_v61  ;;  %v2632_v61 = vor.u32 %v2800_v54, %v2629_v11  ;;  %v2627_v62 = vld [vmem:[#allocation3 + $0x1c8] sm:$0xf]  ;;  %v2801_v53 = vld [vmem:[#allocation3 + $0x1d0] sm:$0xf0]  ;;  %v1806_v15 = vunpack.c.l.bf16 %v3297_v32 }
 0x22a   :  { %v2659_v32 = vld [vmem:[#allocation3 + $0x200] sm:$0xf] }
 0x22b   :  { %v1564_v26 = vadd.f32 %v1563_v34, %v1435_v18  ;;  %v1807_v18 = vunpack.c.l.bf16 %v3283_v28 }
 0x22d   :  { %v1852_v57 = vadd.f32 %v1804_v14, %v1564_v26 }
 0x22e   :  { %v2084_v12 = vpop.f32.mrf.mxu0  ;;  %v1307_v41 = vpop.f32.mrf.mxu1 }
 0x22f   :  { %v2085_v51 = vadd.f32 %v3391_v10, %v2084_v12  ;;  %v1570_v13 = vpop.f32.mrf.mxu3 }
 0x230   :  { %v1436_v20 = vpop.f32.mrf.mxu2 }
 0x231   :  { %2203 = vst [vmem:[#allocation6 + $0x8] sm:$0xff] %v2085_v51  ;;  %v1437_v21 = vadd.f32 %v1436_v20, %v1307_v41  ;;  %v2628_v41 = vor.u32 %v2801_v53, %v2627_v62 }
 0x233   :  { %v1566_v49 = vadd.f32 %v1565_v48, %v1437_v21  ;;  %v2808_v21 = vld [vmem:[#allocation3 + $0x208] sm:$0xf0] }
 0x234   :  { %1612 = vmatmul.bf16.gmra.mxu3 %v2636_v45 }
 0x235   :  { %v1853_v2 = vadd.f32 %v1805_v7, %v1566_v49  ;;  %1478 = vmatmul.bf16.gmra.mxu2 %v2620_v25  ;;  %v2803_v25 = vld [vmem:[#allocation3 + $0x1e4] sm:$0xf]  ;;  %v2660_v49 = vor.u32 %v2808_v21, %v2659_v32 }
 0x236   :  { %v2087_v36 = vpop.f32.mrf.mxu0  ;;  %v1310_v38 = vpop.f32.mrf.mxu1 }
 0x237   :  { %v2088_v16 = vadd.f32 %v3391_v10, %v2087_v36  ;;  %v1990_v34 = vpack.c.bf16 %v1853_v2, %v1852_v57  ;;  %v1573_v9 = vpop.f32.mrf.mxu3  ;;  %v2639_v36 = vld [vmem:[#allocation3 + $0x1e0] sm:$0xf] }
 0x238   :  { %v1439_v55 = vpop.f32.mrf.mxu2 }
 0x239   :  { %2204 = vst [vmem:[#allocation6 + $0x10] sm:$0xff] %v2088_v16  ;;  %2126 = vmatmul.bf16.gmra.mxu0 %v1990_v34  ;;  %1349 = vmatmul.bf16.gmra.mxu1 %v2616_v59  ;;  %v1440_v52 = vadd.f32 %v1439_v55, %v1310_v38  ;;  %v2644_v59 = vor.u32 %v2803_v25, %v2641_v44  ;;  %v2804_v38 = vld [vmem:[#allocation3 + $0x1e8] sm:$0xf0]  ;;  %v1808_v16 = vunpack.c.l.bf16 %v3274_v30  ;;  %v1809_v34 = vunpack.c.l.bf16 %v3262_v39  ;;  %v2671_v30 = vld [vmem:[#allocation3 + $0x218] sm:$0xf] }
 0x23a   :  { %v2640_v43 = vor.u32 %v2804_v38, %v2639_v36 }
 0x23b   :  { %v1569_v27 = vadd.f32 %v1568_v42, %v1440_v52 }
 0x23d   :  { %v1854_v40 = vadd.f32 %v1806_v15, %v1569_v27  ;;  %v2806_v27 = vld [vmem:[#allocation3 + $0x1fc] sm:$0xf] }
 0x23e   :  { %v2089_v47 = vpop.f32.mrf.mxu0  ;;  %v1312_v48 = vpop.f32.mrf.mxu1 }
 0x23f   :  { %v2090_v19 = vadd.f32 %v3391_v10, %v2089_v47  ;;  %v1575_v24 = vpop.f32.mrf.mxu3 }
 0x240   :  { %v1441_v31 = vpop.f32.mrf.mxu2 }
 0x241   :  { %2205 = vst [vmem:[#allocation6 + $0x18] sm:$0xff] %v2090_v19  ;;  %v1442_v17 = vadd.f32 %v1441_v31, %v1312_v48 }
 0x243   :  { %v1571_v4 = vadd.f32 %v1570_v13, %v1442_v17  ;;  %v2653_v17 = vld [vmem:[#allocation3 + $0x204] sm:$0xf0] }
 0x244   :  { %1617 = vmatmul.bf16.gmra.mxu3 %v2648_v3  ;;  %v2811_v3 = vld [vmem:[#allocation3 + $0x220] sm:$0xf0] }
 0x245   :  { %v1855_v12 = vadd.f32 %v1807_v18, %v1571_v4  ;;  %1483 = vmatmul.bf16.gmra.mxu2 %v2632_v61  ;;  %v2672_v15 = vor.u32 %v2811_v3, %v2671_v30 }
 0x246   :  { %v2092_v60 = vpop.f32.mrf.mxu0  ;;  %v1315_v46 = vpop.f32.mrf.mxu1 }
 0x247   :  { %v2093_v51 = vadd.f32 %v3391_v10, %v2092_v60  ;;  %v1991_v42 = vpack.c.bf16 %v1855_v12, %v1854_v40  ;;  %v1578_v20 = vpop.f32.mrf.mxu3  ;;  %v2656_v40 = vor.u32 %v2806_v27, %v2653_v17  ;;  %v2651_v12 = vld [vmem:[#allocation3 + $0x1f8] sm:$0xf]  ;;  %v1810_v60 = vunpack.c.l.bf16 %v3253_v22  ;;  %v2683_v22 = vld [vmem:[#allocation3 + $0x230] sm:$0xf]  ;;  %v2812_v17 = vld [vmem:[#allocation3 + $0x22c] sm:$0xf] }
 0x248   :  { %v1444_v45 = vpop.f32.mrf.mxu2 }
 0x249   :  { %2206 = vst [vmem:[#allocation6 + $0x20] sm:$0xff] %v2093_v51  ;;  %2131 = vmatmul.bf16.gmra.mxu0 %v1991_v42  ;;  %1354 = vmatmul.bf16.gmra.mxu1 %v2628_v41  ;;  %v1445_v26 = vadd.f32 %v1444_v45, %v1315_v46  ;;  %v2807_v41 = vld [vmem:[#allocation3 + $0x200] sm:$0xf0]  ;;  %v1811_v46 = vunpack.c.l.bf16 %v3245_v35 }
 0x24b   :  { %v1574_v57 = vadd.f32 %v1573_v9, %v1445_v26  ;;  %v2652_v26 = vor.u32 %v2807_v41, %v2651_v12  ;;  %v2813_v12 = vld [vmem:[#allocation3 + $0x230] sm:$0xf0]  ;;  %v1814_v41 = vunpack.c.l.bf16 %v3082_v63 }
 0x24d   :  { %v1856_v52 = vadd.f32 %v1808_v16, %v1574_v57 }
 0x24e   :  { %v2094_v28 = vpop.f32.mrf.mxu0  ;;  %v1317_v13 = vpop.f32.mrf.mxu1 }
 0x24f   :  { %v2095_v5 = vadd.f32 %v3391_v10, %v2094_v28  ;;  %v1580_v14 = vpop.f32.mrf.mxu3 }
 0x250   :  { %v1446_v7 = vpop.f32.mrf.mxu2 }
 0x251   :  { %2207 = vst [vmem:[#allocation6 + $0x28] sm:$0xff] %v2095_v5  ;;  %v1447_v2 = vadd.f32 %v1446_v7, %v1317_v13  ;;  %v2814_v5 = vld [vmem:[#allocation3 + $0x238] sm:$0xf0]  ;;  %v2809_v7 = vld [vmem:[#allocation3 + $0x214] sm:$0xf] }
 0x252   :  { %v2684_v36 = vor.u32 %v2814_v5, %v2683_v22 }
 0x253   :  { %v1576_v55 = vadd.f32 %v1575_v24, %v1447_v2 }
 0x254   :  { %1622 = vmatmul.bf16.gmra.mxu3 %v2660_v49  ;;  %v2665_v49 = vld [vmem:[#allocation3 + $0x21c] sm:$0xf0] }
 0x255   :  { %v1857_v23 = vadd.f32 %v1809_v34, %v1576_v55  ;;  %1488 = vmatmul.bf16.gmra.mxu2 %v2644_v59  ;;  %v2668_v34 = vor.u32 %v2809_v7, %v2665_v49  ;;  %v2663_v55 = vld [vmem:[#allocation3 + $0x210] sm:$0xf]  ;;  %v1816_v7 = vunpack.c.l.bf16 %v3075_v58 }
 0x256   :  { %v2097_v47 = vpop.f32.mrf.mxu0  ;;  %v1320_v48 = vpop.f32.mrf.mxu1 }
 0x257   :  { %v2098_v54 = vadd.f32 %v3391_v10, %v2097_v47  ;;  %v1992_v9 = vpack.c.bf16 %v1857_v23, %v1856_v52  ;;  %v1583_v11 = vpop.f32.mrf.mxu3  ;;  %v2810_v52 = vld [vmem:[#allocation3 + $0x218] sm:$0xf0]  ;;  %v1812_v23 = vunpack.c.l.bf16 %v3240_v8  ;;  %v1813_v47 = vunpack.c.l.bf16 %v3249_v37  ;;  %v2677_v37 = vld [vmem:[#allocation3 + $0x234] sm:$0xf0] }
 0x258   :  { %v1449_v19 = vpop.f32.mrf.mxu2 }
 0x259   :  { %2208 = vst [vmem:[#allocation6 + $0x30] sm:$0xff] %v2098_v54  ;;  %2136 = vmatmul.bf16.gmra.mxu0 %v1992_v9  ;;  %1359 = vmatmul.bf16.gmra.mxu1 %v2640_v43  ;;  %v1450_v31 = vadd.f32 %v1449_v19, %v1320_v48  ;;  %v2664_v9 = vor.u32 %v2810_v52, %v2663_v55 }
 0x25b   :  { %v1579_v18 = vadd.f32 %v1578_v20, %v1450_v31 }
 0x25d   :  { %v1858_v42 = vadd.f32 %v1810_v60, %v1579_v18 }
 0x25e   :  { %v2099_v39 = vpop.f32.mrf.mxu0  ;;  %v1322_v24 = vpop.f32.mrf.mxu1 }
 0x25f   :  { %v2100_v61 = vadd.f32 %v3391_v10, %v2099_v39  ;;  %v1585_v62 = vpop.f32.mrf.mxu3 }
 0x260   :  { %v1451_v53 = vpop.f32.mrf.mxu2 }
 0x261   :  { %2209 = vst [vmem:[#allocation6 + $0x38] sm:$0xff] %v2100_v61  ;;  %v1452_v4 = vadd.f32 %v1451_v53, %v1322_v24 }
 0x263   :  { %v1581_v51 = vadd.f32 %v1580_v14, %v1452_v4  ;;  %v2680_v4 = vor.u32 %v2812_v17, %v2677_v37 }
 0x264   :  { %1627 = vmatmul.bf16.gmra.mxu3 %v2672_v15 }
 0x265   :  { %v1859_v45 = vadd.f32 %v1811_v46, %v1581_v51  ;;  %1493 = vmatmul.bf16.gmra.mxu2 %v2656_v40  ;;  %v2675_v40 = vld [vmem:[#allocation3 + $0x228] sm:$0xf]  ;;  %v1815_v46 = vunpack.c.l.bf16 %v3084_v0 }
 0x266   :  { %v2102_v32 = vpop.f32.mrf.mxu0  ;;  %v1325_v21 = vpop.f32.mrf.mxu1 }
 0x267   :  { %v2103_v28 = vadd.f32 %v3391_v10, %v2102_v32  ;;  %v1993_v20 = vpack.c.bf16 %v1859_v45, %v1858_v42  ;;  %v1588_v13 = vpop.f32.mrf.mxu3  ;;  %v2676_v45 = vor.u32 %v2813_v12, %v2675_v40  ;;  %v1820_v40 = vunpack.c.l.bf16 %v3201_v29 }
 0x268   :  { %v1454_v25 = vpop.f32.mrf.mxu2 }
 0x269   :  { %2210 = vst [vmem:[#allocation6 + $0x40] sm:$0xff] %v2103_v28  ;;  %2141 = vmatmul.bf16.gmra.mxu0 %v1993_v20  ;;  %1364 = vmatmul.bf16.gmra.mxu1 %v2652_v26  ;;  %v1455_v44 = vadd.f32 %v1454_v25, %v1325_v21 }
 0x26b   :  { %v1584_v38 = vadd.f32 %v1583_v11, %v1455_v44 }
 0x26d   :  { %v1860_v48 = vadd.f32 %v1812_v23, %v1584_v38 }
 0x26e   :  { %v2104_v35 = vpop.f32.mrf.mxu0  ;;  %v1327_v14 = vpop.f32.mrf.mxu1 }
 0x26f   :  { %v2105_v57 = vadd.f32 %v3391_v10, %v2104_v35  ;;  %v1590_v2 = vpop.f32.mrf.mxu3 }
 0x270   :  { %v1456_v59 = vpop.f32.mrf.mxu2 }
 0x271   :  { %2211 = vst [vmem:[#allocation6 + $0x48] sm:$0xff] %v2105_v57  ;;  %v1457_v16 = vadd.f32 %v1456_v59, %v1327_v14  ;;  %v1817_v57 = vunpack.c.l.bf16 %v3086_v1 }
 0x273   :  { %v1586_v43 = vadd.f32 %v1585_v62, %v1457_v16 }
 0x274   :  { %1632 = vmatmul.bf16.gmra.mxu3 %v2684_v36 }
 0x275   :  { %v1861_v54 = vadd.f32 %v1813_v47, %v1586_v43  ;;  %1498 = vmatmul.bf16.gmra.mxu2 %v2668_v34 }
 0x276   :  { %v2107_v19 = vpop.f32.mrf.mxu0  ;;  %v1330_v31 = vpop.f32.mrf.mxu1 }
 0x277   :  { %v2108_v30 = vadd.f32 %v3391_v10, %v2107_v19  ;;  %v1994_v11 = vpack.c.bf16 %v1861_v54, %v1860_v48  ;;  %v1593_v3 = vpop.f32.mrf.mxu3  ;;  %v1818_v19 = vunpack.c.l.bf16 %v3165_v56 }
 0x278   :  { %v1459_v39 = vpop.f32.mrf.mxu2 }
 0x279   :  { %2212 = vst [vmem:[#allocation6 + $0x50] sm:$0xff] %v2108_v30  ;;  %2146 = vmatmul.bf16.gmra.mxu0 %v1994_v11  ;;  %1369 = vmatmul.bf16.gmra.mxu1 %v2664_v9  ;;  %v1460_v24 = vadd.f32 %v1459_v39, %v1330_v31  ;;  %v1819_v30 = vunpack.c.l.bf16 %v3179_v6 }
 0x27b   :  { %v1589_v15 = vadd.f32 %v1588_v13, %v1460_v24 }
 0x27d   :  { %v1862_v51 = vadd.f32 %v1814_v41, %v1589_v15  ;;  %v1821_v41 = vunpack.c.l.bf16 %v3224_v33 }
 0x27e   :  { %v2109_v8 = vpop.f32.mrf.mxu0  ;;  %v1332_v27 = vpop.f32.mrf.mxu1 }
 0x27f   :  { %v2110_v61 = vadd.f32 %v3391_v10, %v2109_v8  ;;  %v1595_v62 = vpop.f32.mrf.mxu3 }
 0x280   :  { %v1461_v53 = vpop.f32.mrf.mxu2 }
 0x281   :  { %2213 = vst [vmem:[#allocation6 + $0x58] sm:$0xff] %v2110_v61  ;;  %v1462_v18 = vadd.f32 %v1461_v53, %v1332_v27 }
 0x283   :  { %v1591_v60 = vadd.f32 %v1590_v2, %v1462_v18 }
 0x285   :  { %v1863_v42 = vadd.f32 %v1815_v46, %v1591_v60  ;;  %1503 = vmatmul.bf16.gmra.mxu2 %v2680_v4 }
 0x286   :  { %v2112_v26 = vpop.f32.mrf.mxu0  ;;  %v1335_v32 = vpop.f32.mrf.mxu1 }
 0x287   :  { %v2113_v21 = vadd.f32 %v3391_v10, %v2112_v26  ;;  %v1995_v28 = vpack.c.bf16 %v1863_v42, %v1862_v51  ;;  %v1598_v20 = vpop.f32.mrf.mxu3 }
 0x288   :  { %v1464_v13 = vpop.f32.mrf.mxu2 }
 0x289   :  { %2214 = vst [vmem:[#allocation6 + $0x60] sm:$0xff] %v2113_v21  ;;  %2151 = vmatmul.bf16.gmra.mxu0 %v1995_v28  ;;  %1374 = vmatmul.bf16.gmra.mxu1 %v2676_v45  ;;  %v1465_v25 = vadd.f32 %v1464_v13, %v1335_v32 }
 0x28b   :  { %v1594_v35 = vadd.f32 %v1593_v3, %v1465_v25 }
 0x28d   :  { %v1864_v2 = vadd.f32 %v1816_v7, %v1594_v35 }
 0x28e   :  { %v2114_v44 = vpop.f32.mrf.mxu0  ;;  %v1337_v63 = vpop.f32.mrf.mxu1 }
 0x28f   :  { %v2115_v22 = vadd.f32 %v3391_v10, %v2114_v44  ;;  %v1600_v0 = vpop.f32.mrf.mxu3 }
 0x290   :  { %v1466_v5 = vpop.f32.mrf.mxu2 }
 0x291   :  { %2215 = vst [vmem:[#allocation6 + $0x68] sm:$0xff] %v2115_v22  ;;  %v1467_v14 = vadd.f32 %v1466_v5, %v1337_v63  ;;  %v1822_v22 = vunpack.c.l.bf16 %v3206_v50  ;;  %v3508_v5 = vld [vmem:[#allocation18_spill] sm:$0xff] }
 0x292   :  { %v1823_v35 = vunpack.c.l.bf16 %v3508_v5 }
 0x293   :  { %v1596_v49 = vadd.f32 %v1595_v62, %v1467_v14 }
 0x295   :  { %v1865_v59 = vadd.f32 %v1817_v57, %v1596_v49 }
 0x296   :  { %v2117_v36 = vpop.f32.mrf.mxu0  ;;  %v1340_v38 = vpop.f32.mrf.mxu1 }
 0x297   :  { %v2118_v16 = vadd.f32 %v3391_v10, %v2117_v36  ;;  %v1996_v34 = vpack.c.bf16 %v1865_v59, %v1864_v2  ;;  %v1603_v55 = vpop.f32.mrf.mxu3 }
 0x298   :  { %v1469_v52 = vpop.f32.mrf.mxu2 }
 0x299   :  { %2216 = vst [vmem:[#allocation6 + $0x70] sm:$0xff] %v2118_v16  ;;  %2156 = vmatmul.bf16.gmra.mxu0 %v1996_v34  ;;  %v1470_v23 = vadd.f32 %v1469_v52, %v1340_v38 }
 0x29b   :  { %v1599_v9 = vadd.f32 %v1598_v20, %v1470_v23 }
 0x29d   :  { %v1866_v11 = vadd.f32 %v1818_v19, %v1599_v9 }
 0x29e   :  { %v2119_v43 = vpop.f32.mrf.mxu0  ;;  %v1342_v47 = vpop.f32.mrf.mxu1 }
 0x29f   :  { %v2120_v48 = vadd.f32 %v3391_v10, %v2119_v43  ;;  %v1605_v58 = vpop.f32.mrf.mxu3 }
 0x2a0   :  { %v1471_v54 = vpop.f32.mrf.mxu2 }
 0x2a1   :  { %2217 = vst [vmem:[#allocation6 + $0x78] sm:$0xff] %v2120_v48  ;;  %v1472_v1 = vadd.f32 %v1471_v54, %v1342_v47  ;;  %v3509_v47 = vld [vmem:[#allocation17_spill] sm:$0xff]  ;;  %v3510_v54 = vld [vmem:[#allocation19_spill] sm:$0xff] }
 0x2a2   :  { %v1824_v48 = vunpack.c.l.bf16 %v3509_v47  ;;  %v1825_v9 = vunpack.c.l.bf16 %v3510_v54 }
 0x2a3   :  { %v1601_v31 = vadd.f32 %v1600_v0, %v1472_v1 }
 0x2a5   :  { %v1867_v3 = vadd.f32 %v1819_v30, %v1601_v31 }
 0x2a6   :  { %v2122_v39 = vpop.f32.mrf.mxu0  ;;  %v1345_v24 = vpop.f32.mrf.mxu1 }
 0x2a7   :  { %v2123_v8 = vadd.f32 %v3391_v10, %v2122_v39  ;;  %v1997_v27 = vpack.c.bf16 %v1867_v3, %v1866_v11  ;;  %v1608_v17 = vpop.f32.mrf.mxu3 }
 0x2a8   :  { %v1474_v37 = vpop.f32.mrf.mxu2 }
 0x2a9   :  { %2218 = vst [vmem:[#allocation6 + $0x80] sm:$0xff] %v2123_v8  ;;  %2161 = vmatmul.bf16.gmra.mxu0 %v1997_v27  ;;  %v1475_v61 = vadd.f32 %v1474_v37, %v1345_v24 }
 0x2ab   :  { %v1604_v4 = vadd.f32 %v1603_v55, %v1475_v61 }
 0x2ad   :  { %v1868_v60 = vadd.f32 %v1820_v40, %v1604_v4 }
 0x2ae   :  { %v2124_v62 = vpop.f32.mrf.mxu0  ;;  %v1347_v53 = vpop.f32.mrf.mxu1 }
 0x2af   :  { %v2125_v15 = vadd.f32 %v3391_v10, %v2124_v62  ;;  %v1610_v56 = vpop.f32.mrf.mxu3 }
 0x2b0   :  { %v1476_v18 = vpop.f32.mrf.mxu2 }
 0x2b1   :  { %2219 = vst [vmem:[#allocation6 + $0x88] sm:$0xff] %v2125_v15  ;;  %v1477_v6 = vadd.f32 %v1476_v18, %v1347_v53 }
 0x2b3   :  { %v1606_v12 = vadd.f32 %v1605_v58, %v1477_v6  ;;  %v3512_v6 = vld [vmem:[#allocation16_spill] sm:$0xff] }
 0x2b4   :  { %v1827_v40 = vunpack.c.l.bf16 %v3512_v6 }
 0x2b5   :  { %v1869_v46 = vadd.f32 %v1821_v41, %v1606_v12 }
 0x2b6   :  { %v2127_v51 = vpop.f32.mrf.mxu0  ;;  %v1350_v42 = vpop.f32.mrf.mxu1 }
 0x2b7   :  { %v2128_v45 = vadd.f32 %v3391_v10, %v2127_v51  ;;  %v1998_v26 = vpack.c.bf16 %v1869_v46, %v1868_v60  ;;  %v1613_v32 = vpop.f32.mrf.mxu3 }
 0x2b8   :  { %v1479_v21 = vpop.f32.mrf.mxu2 }
 0x2b9   :  { %2220 = vst [vmem:[#allocation6 + $0x90] sm:$0xff] %v2128_v45  ;;  %2166 = vmatmul.bf16.gmra.mxu0 %v1998_v26  ;;  %v1480_v28 = vadd.f32 %v1479_v21, %v1350_v42 }
 0x2bb   :  { %v1609_v44 = vadd.f32 %v1608_v17, %v1480_v28 }
 0x2bd   :  { %v1870_v14 = vadd.f32 %v1822_v22, %v1609_v44  ;;  %v3513_v44 = vld [vmem:[#allocation13_spill] sm:$0xff]  ;;  %v3514_v22 = vld [vmem:[#allocation14_spill] sm:$0xff] }
 0x2be   :  { %v2129_v20 = vpop.f32.mrf.mxu0  ;;  %v1352_v13 = vpop.f32.mrf.mxu1 }
 0x2bf   :  { %v2130_v25 = vadd.f32 %v3391_v10, %v2129_v20  ;;  %v1615_v63 = vpop.f32.mrf.mxu3 }
 0x2c0   :  { %v1481_v29 = vpop.f32.mrf.mxu2 }
 0x2c1   :  { %2221 = vst [vmem:[#allocation6 + $0x98] sm:$0xff] %v2130_v25  ;;  %v1482_v33 = vadd.f32 %v1481_v29, %v1352_v13 }
 0x2c3   :  { %v1611_v0 = vadd.f32 %v1610_v56, %v1482_v33  ;;  %v3511_v56 = vld [vmem:[#allocation15_spill] sm:$0xff]  ;;  %v1828_v33 = vunpack.c.l.bf16 %v3513_v44 }
 0x2c4   :  { %v1826_v18 = vunpack.c.l.bf16 %v3511_v56 }
 0x2c5   :  { %v1871_v7 = vadd.f32 %v1823_v35, %v1611_v0  ;;  %v1829_v0 = vunpack.c.l.bf16 %v3514_v22 }
 0x2c6   :  { %v2132_v49 = vpop.f32.mrf.mxu0  ;;  %v1355_v57 = vpop.f32.mrf.mxu1 }
 0x2c7   :  { %v2133_v2 = vadd.f32 %v3391_v10, %v2132_v49  ;;  %v1999_v59 = vpack.c.bf16 %v1871_v7, %v1870_v14  ;;  %v1618_v38 = vpop.f32.mrf.mxu3 }
 0x2c8   :  { %v1484_v36 = vpop.f32.mrf.mxu2 }
 0x2c9   :  { %2222 = vst [vmem:[#allocation6 + $0xa0] sm:$0xff] %v2133_v2  ;;  %2171 = vmatmul.bf16.gmra.mxu0 %v1999_v59  ;;  %v1485_v16 = vadd.f32 %v1484_v36, %v1355_v57 }
 0x2cb   :  { %v1614_v23 = vadd.f32 %v1613_v32, %v1485_v16 }
 0x2cd   :  { %v1872_v1 = vadd.f32 %v1824_v48, %v1614_v23 }
 0x2ce   :  { %v2134_v34 = vpop.f32.mrf.mxu0  ;;  %v1357_v55 = vpop.f32.mrf.mxu1 }
 0x2cf   :  { %v2135_v52 = vadd.f32 %v3391_v10, %v2134_v34  ;;  %v1620_v31 = vpop.f32.mrf.mxu3 }
 0x2d0   :  { %v1486_v50 = vpop.f32.mrf.mxu2 }
 0x2d1   :  { %2223 = vst [vmem:[#allocation6 + $0xa8] sm:$0xff] %v2135_v52  ;;  %v1487_v43 = vadd.f32 %v1486_v50, %v1357_v55 }
 0x2d3   :  { %v1616_v58 = vadd.f32 %v1615_v63, %v1487_v43  ;;  %v3515_v43 = vld [vmem:[#allocation10_spill] sm:$0xff] }
 0x2d4   :  { %v1830_v47 = vunpack.c.l.bf16 %v3515_v43 }
 0x2d5   :  { %v1873_v19 = vadd.f32 %v1825_v9, %v1616_v58  ;;  %v3516_v58 = vld [vmem:[#allocation11_spill] sm:$0xff] }
 0x2d6   :  { %v2137_v30 = vpop.f32.mrf.mxu0  ;;  %v1360_v11 = vpop.f32.mrf.mxu1  ;;  %v1831_v54 = vunpack.c.l.bf16 %v3516_v58 }
 0x2d7   :  { %v2138_v3 = vadd.f32 %v3391_v10, %v2137_v30  ;;  %v2000_v39 = vpack.c.bf16 %v1873_v19, %v1872_v1  ;;  %v1623_v61 = vpop.f32.mrf.mxu3 }
 0x2d8   :  { %v1489_v24 = vpop.f32.mrf.mxu2 }
 0x2d9   :  { %2224 = vst [vmem:[#allocation6 + $0xb0] sm:$0xff] %v2138_v3  ;;  %2176 = vmatmul.bf16.gmra.mxu0 %v2000_v39  ;;  %v1490_v8 = vadd.f32 %v1489_v24, %v1360_v11 }
 0x2db   :  { %v1619_v53 = vadd.f32 %v1618_v38, %v1490_v8 }
 0x2dd   :  { %v1874_v12 = vadd.f32 %v1826_v18, %v1619_v53 }
 0x2de   :  { %v2139_v27 = vpop.f32.mrf.mxu0  ;;  %v1362_v17 = vpop.f32.mrf.mxu1 }
 0x2df   :  { %v2140_v37 = vadd.f32 %v3391_v10, %v2139_v27  ;;  %v1625_v26 = vpop.f32.mrf.mxu3 }
 0x2e0   :  { %v1491_v62 = vpop.f32.mrf.mxu2 }
 0x2e1   :  { %2225 = vst [vmem:[#allocation6 + $0xb8] sm:$0xff] %v2140_v37  ;;  %v1492_v15 = vadd.f32 %v1491_v62, %v1362_v17 }
 0x2e3   :  { %v1621_v4 = vadd.f32 %v1620_v31, %v1492_v15  ;;  %v3517_v15 = vld [vmem:[#allocation9_spill] sm:$0xff] }
 0x2e4   :  { %v1832_v56 = vunpack.c.l.bf16 %v3517_v15 }
 0x2e5   :  { %v1875_v41 = vadd.f32 %v1827_v40, %v1621_v4  ;;  %v3518_v4 = vld [vmem:[#allocation12_spill] sm:$0xff] }
 0x2e6   :  { %v2142_v60 = vpop.f32.mrf.mxu0  ;;  %v1365_v46 = vpop.f32.mrf.mxu1  ;;  %v1833_v6 = vunpack.c.l.bf16 %v3518_v4 }
 0x2e7   :  { %v2143_v51 = vadd.f32 %v3391_v10, %v2142_v60  ;;  %v2001_v42 = vpack.c.bf16 %v1875_v41, %v1874_v12  ;;  %v1628_v5 = vpop.f32.mrf.mxu3 }
 0x2e8   :  { %v1494_v45 = vpop.f32.mrf.mxu2 }
 0x2e9   :  { %2226 = vst [vmem:[#allocation6 + $0xc0] sm:$0xff] %v2143_v51  ;;  %2181 = vmatmul.bf16.gmra.mxu0 %v2001_v42  ;;  %v1495_v32 = vadd.f32 %v1494_v45, %v1365_v46 }
 0x2eb   :  { %v1624_v25 = vadd.f32 %v1623_v61, %v1495_v32 }
 0x2ed   :  { %v1876_v35 = vadd.f32 %v1828_v33, %v1624_v25 }
 0x2ee   :  { %v2144_v21 = vpop.f32.mrf.mxu0  ;;  %v1367_v28 = vpop.f32.mrf.mxu1 }
 0x2ef   :  { %v2145_v20 = vadd.f32 %v3391_v10, %v2144_v21  ;;  %v1630_v38 = vpop.f32.mrf.mxu3 }
 0x2f0   :  { %v1496_v13 = vpop.f32.mrf.mxu2 }
 0x2f1   :  { %2227 = vst [vmem:[#allocation6 + $0xc8] sm:$0xff] %v2145_v20  ;;  %v1497_v29 = vadd.f32 %v1496_v13, %v1367_v28 }
 0x2f3   :  { %v1626_v63 = vadd.f32 %v1625_v26, %v1497_v29 }
 0x2f5   :  { %v1877_v14 = vadd.f32 %v1829_v0, %v1626_v63 }
 0x2f6   :  { %v2147_v7 = vpop.f32.mrf.mxu0  ;;  %v1370_v49 = vpop.f32.mrf.mxu1 }
 0x2f7   :  { %v2148_v57 = vadd.f32 %v3391_v10, %v2147_v7  ;;  %v2002_v2 = vpack.c.bf16 %v1877_v14, %v1876_v35  ;;  %v1633_v39 = vpop.f32.mrf.mxu3 }
 0x2f8   :  { %v1499_v59 = vpop.f32.mrf.mxu2 }
 0x2f9   :  { %2228 = vst [vmem:[#allocation6 + $0xd0] sm:$0xff] %v2148_v57  ;;  %2186 = vmatmul.bf16.gmra.mxu0 %v2002_v2  ;;  %v1500_v36 = vadd.f32 %v1499_v59, %v1370_v49 }
 0x2fb   :  { %v1629_v50 = vadd.f32 %v1628_v5, %v1500_v36 }
 0x2fd   :  { %v1878_v9 = vadd.f32 %v1830_v47, %v1629_v50 }
 0x2fe   :  { %v2149_v16 = vpop.f32.mrf.mxu0  ;;  %v1372_v34 = vpop.f32.mrf.mxu1 }
 0x2ff   :  { %v2150_v55 = vadd.f32 %v3391_v10, %v2149_v16  ;;  %v1635_v53 = vpop.f32.mrf.mxu3 }
 0x300   :  { %v1501_v52 = vpop.f32.mrf.mxu2 }
 0x301   :  { %2229 = vst [vmem:[#allocation6 + $0xd8] sm:$0xff] %v2150_v55  ;;  %v1502_v23 = vadd.f32 %v1501_v52, %v1372_v34 }
 0x303   :  { %v1631_v48 = vadd.f32 %v1630_v38, %v1502_v23 }
 0x305   :  { %v1879_v1 = vadd.f32 %v1831_v54, %v1631_v48 }
 0x306   :  { %v2152_v19 = vpop.f32.mrf.mxu0  ;;  %v1375_v31 = vpop.f32.mrf.mxu1 }
 0x307   :  { %v2153_v30 = vadd.f32 %v3391_v10, %v2152_v19  ;;  %v2003_v11 = vpack.c.bf16 %v1879_v1, %v1878_v9 }
 0x308   :  { %v1504_v3 = vpop.f32.mrf.mxu2 }
 0x309   :  { %2230 = vst [vmem:[#allocation6 + $0xe0] sm:$0xff] %v2153_v30  ;;  %2191 = vmatmul.bf16.gmra.mxu0 %v2003_v11  ;;  %v1505_v24 = vadd.f32 %v1504_v3, %v1375_v31 }
 0x30b   :  { %v1634_v61 = vadd.f32 %v1633_v39, %v1505_v24 }
 0x30d   :  { %v1880_v40 = vadd.f32 %v1832_v56, %v1634_v61 }
 0x30e   :  { %v2154_v8 = vpop.f32.mrf.mxu0  ;;  %v1377_v17 = vpop.f32.mrf.mxu1 }
 0x30f   :  { %v2155_v27 = vadd.f32 %v3391_v10, %v2154_v8 }
 0x310   :  { %v1506_v37 = vpop.f32.mrf.mxu2 }
 0x311   :  { %2231 = vst [vmem:[#allocation6 + $0xe8] sm:$0xff] %v2155_v27  ;;  %v1507_v62 = vadd.f32 %v1506_v37, %v1377_v17 }
 0x313   :  { %v1636_v18 = vadd.f32 %v1635_v53, %v1507_v62 }
 0x315   :  { %v1881_v12 = vadd.f32 %v1833_v6, %v1636_v18 }
 0x316   :  { %v2157_v41 = vpop.f32.mrf.mxu0 }
 0x317   :  { %v2004_v60 = vpack.c.bf16 %v1881_v12, %v1880_v40  ;;  %v2158_v46 = vadd.f32 %v3391_v10, %v2157_v41 }
 0x319   :  { %2232 = vst [vmem:[#allocation6 + $0xf0] sm:$0xff] %v2158_v46  ;;  %2196 = vmatmul.bf16.vlgmr.msra.gmra.mxu3 %v2004_v60 }
 0x31e   :  { %v2159_v51 = vpop.f32.mrf.mxu0 }
 0x31f   :  { %v2160_v42 = vadd.f32 %v3391_v10, %v2159_v51 }
 0x321   :  { %2233 = vst [vmem:[#allocation6 + $0xf8] sm:$0xff] %v2160_v42 }
 0x326   :  { %v2162_v45 = vpop.f32.mrf.mxu0 }
 0x327   :  { %v2163_v26 = vadd.f32 %v3391_v10, %v2162_v45 }
 0x329   :  { %2234 = vst [vmem:[#allocation6 + $0x100] sm:$0xff] %v2163_v26 }
 0x32e   :  { %v2164_v32 = vpop.f32.mrf.mxu0 }
 0x32f   :  { %v2165_v21 = vadd.f32 %v3391_v10, %v2164_v32 }
 0x331   :  { %2235 = vst [vmem:[#allocation6 + $0x108] sm:$0xff] %v2165_v21 }
 0x336   :  { %v2167_v28 = vpop.f32.mrf.mxu0 }
 0x337   :  { %v2168_v20 = vadd.f32 %v3391_v10, %v2167_v28 }
 0x339   :  { %2236 = vst [vmem:[#allocation6 + $0x110] sm:$0xff] %v2168_v20 }
 0x33e   :  { %v2169_v13 = vpop.f32.mrf.mxu0 }
 0x33f   :  { %v2170_v25 = vadd.f32 %v3391_v10, %v2169_v13 }
 0x341   :  { %2237 = vst [vmem:[#allocation6 + $0x118] sm:$0xff] %v2170_v25 }
 0x346   :  { %v2172_v29 = vpop.f32.mrf.mxu0 }
 0x347   :  { %v2173_v44 = vadd.f32 %v3391_v10, %v2172_v29 }
 0x349   :  { %2238 = vst [vmem:[#allocation6 + $0x120] sm:$0xff] %v2173_v44 }
 0x34e   :  { %v2174_v33 = vpop.f32.mrf.mxu0 }
 0x34f   :  { %v2175_v63 = vadd.f32 %v3391_v10, %v2174_v33 }
 0x351   :  { %2239 = vst [vmem:[#allocation6 + $0x128] sm:$0xff] %v2175_v63 }
 0x356   :  { %v2177_v22 = vpop.f32.mrf.mxu0 }
 0x357   :  { %v2178_v0 = vadd.f32 %v3391_v10, %v2177_v22 }
 0x359   :  { %2240 = vst [vmem:[#allocation6 + $0x130] sm:$0xff] %v2178_v0 }
 0x35e   :  { %v2179_v5 = vpop.f32.mrf.mxu0 }
 0x35f   :  { %v2180_v35 = vadd.f32 %v3391_v10, %v2179_v5 }
 0x361   :  { %2241 = vst [vmem:[#allocation6 + $0x138] sm:$0xff] %v2180_v35 }
 0x366   :  { %v2182_v14 = vpop.f32.mrf.mxu0 }
 0x367   :  { %v2183_v7 = vadd.f32 %v3391_v10, %v2182_v14 }
 0x369   :  { %2242 = vst [vmem:[#allocation6 + $0x140] sm:$0xff] %v2183_v7 }
 0x36e   :  { %v2184_v49 = vpop.f32.mrf.mxu0 }
 0x36f   :  { %v2185_v57 = vadd.f32 %v3391_v10, %v2184_v49 }
 0x371   :  { %2243 = vst [vmem:[#allocation6 + $0x148] sm:$0xff] %v2185_v57 }
 0x376   :  { %v2187_v2 = vpop.f32.mrf.mxu0 }
 0x377   :  { %v2188_v59 = vadd.f32 %v3391_v10, %v2187_v2 }
 0x379   :  { %2244 = vst [vmem:[#allocation6 + $0x150] sm:$0xff] %v2188_v59 }
 0x37e   :  { %v2189_v36 = vpop.f32.mrf.mxu0 }
 0x37f   :  { %v2190_v38 = vadd.f32 %v3391_v10, %v2189_v36 }
 0x381   :  { %2245 = vst [vmem:[#allocation6 + $0x158] sm:$0xff] %v2190_v38 }
 0x386   :  { %v2192_v16 = vpop.f32.mrf.mxu0 }
 0x387   :  { %v2193_v34 = vadd.f32 %v3391_v10, %v2192_v16 }
 0x389   :  { %2246 = vst [vmem:[#allocation6 + $0x160] sm:$0xff] %v2193_v34 }
 0x38e   :  { %v2194_v55 = vpop.f32.mrf.mxu0 }
 0x38f   :  { %v2195_v52 = vadd.f32 %v3391_v10, %v2194_v55 }
 0x391   :  { %2247 = vst [vmem:[#allocation6 + $0x168] sm:$0xff] %v2195_v52 }
 0x39c   :  { %v2197_v50 = vpop.f32.mrf.mxu3 }
 0x39d   :  { %v2198_v23 = vadd.f32 %v3391_v10, %v2197_v50 }
 0x39f   :  { %2248 = vst [vmem:[#allocation6 + $0x170] sm:$0xff] %v2198_v23 }
 0x3a4   :  { %v2199_v43 = vpop.f32.mrf.mxu3 }
 0x3a5   :  { %v2200_v47 = vadd.f32 %v3391_v10, %v2199_v43 }
 0x3a7   :  { %2249 = vst [vmem:[#allocation6 + $0x178] sm:$0xff] %v2200_v47 }
 0x3a8   :  { %2262 = dma.vmem_to_hbm [thread:$0]  %s2255_s19, 6144, %s2257_s22, [#allocation5], %s2901_s23, %s2901_s23, %s2902_s24  }
 0x3a9   :  { %2895 = dma.done.wait [#allocation5], 6144  }
 0x3aa   :  { %2896 = vsyncadd [#allocation5], 4294961152 }
 0x3ab   :  { %2267 = vsyncpa [#allocation4], 1 }
 0x3ac   :  { %2268 = vsyncpa [#allocation5], 1 }

</bundles_post_ra>
